<compile_context>
chip_gen: v5e
topology: v5e:2x2
jax: 0.10.0
libtpu: 0.0.40
codegen_flags: <defaults>
</compile_context>

<pallas_src>
import functools

import numpy as np

import jax
import jax.numpy as jnp
from jax.experimental import pallas as pl
from jax.experimental.pallas import tpu as pltpu

KH = KW = 3  # 3x3 kernels, padding=1 ("same")


def _build_tap_masks(N, H, W):
    """(9, N*H*W) f32 border masks, per-image coordinates (trace-time const)."""
    HW = H * W
    pos = np.arange(N * HW)
    pp = pos % HW            # per-image pixel index -> also masks image wrap
    row = pp // W
    col = pp % W
    masks = np.zeros((KH * KW, N * HW), np.float32)
    t = 0
    for kh in range(KH):
        for kw in range(KW):
            dh, dw = kh - 1, kw - 1
            m = ((row + dh >= 0) & (row + dh < H)
                 & (col + dw >= 0) & (col + dw < W))
            masks[t] = m.astype(np.float32)
            t += 1
    return jnp.asarray(masks)


def _carrot_kernel(x_ref, m_ref, w1_ref, b1_ref, w2_ref, b2_ref,
                   y1_ref, y2_ref, *, H, W, N):
    """Fused conv1+conv2, batch*pixels on the lane axis.

    x_ref : (Cin, N*H*W)      flattened input (lane-dense)
    m_ref : (9, N*H*W)        f32 border masks (one row per 3x3 tap)
    w1_ref: (C1, 9*Cin)       conv1 weights, tap-major flattened
    b1_ref: (C1, 1)           conv1 bias
    w2_ref: (C2, 9*C1)        conv2 weights
    b2_ref: (C2, 1)           conv2 bias
    y1_ref: (C1, N*H*W)       conv1 output
    y2_ref: (C2, N*H*W)       conv2 output
    """
    NHW = N * H * W

    # Static tap shifts: out[p] needs x[p + dh*W + dw] => roll by -(dh*W + dw).
    shifts = []
    for kh in range(KH):
        for kw in range(KW):
            dh, dw = kh - 1, kw - 1
            shifts.append((-(dh * W + dw)) % NHW)

    def stack_taps(x_flat):
        # x_flat: (C, NHW) f32 -> (9*C, NHW): masked lane-rotations stacked
        # along the contraction axis (tap-major, matching weight flattening).
        taps = []
        for t in range(KH * KW):
            s = shifts[t]
            shifted = x_flat if s == 0 else pltpu.roll(x_flat, s, axis=1)
            taps.append(shifted * m_ref[pl.ds(t, 1), :])   # (C, NHW)
        return jnp.concatenate(taps, axis=0)

    x = x_ref[...].astype(jnp.float32)                     # (Cin, NHW)

    p1 = stack_taps(x)                                     # (9*Cin, NHW)
    y1 = jnp.dot(w1_ref[...], p1,
                 preferred_element_type=jnp.float32,
                 precision=jax.lax.Precision.HIGHEST) + b1_ref[...]
    y1_ref[...] = y1.astype(y1_ref.dtype)

    p2 = stack_taps(y1)                                    # (9*C1, NHW)
    y2 = jnp.dot(w2_ref[...], p2,
                 preferred_element_type=jnp.float32,
                 precision=jax.lax.Precision.HIGHEST) + b2_ref[...]
    y2_ref[...] = y2.astype(y2_ref.dtype)


@jax.jit
def carrot_forward(x_nchw, params):
    """Matches Carrot.forward: returns (conv1(x), conv2(conv1(x))) in NCHW."""
    w1, b1, w2, b2 = params                 # PyTorch OIHW weights
    N, Cin, H, W = x_nchw.shape
    C1, C2 = w1.shape[0], w2.shape[0]
    NHW = N * H * W

    # Tiny wrapper-side layout ops (a few KB): NCHW -> (Cin, N*H*W).
    x_flat = jnp.transpose(x_nchw, (1, 0, 2, 3)).reshape(Cin, NHW)
    masks = _build_tap_masks(N, H, W)                      # (9, NHW) constant

    # OIHW -> (Cout, 9*Cin), tap-major (tap = kh*3 + kw) to match stack_taps.
    w1_flat = jnp.transpose(w1, (0, 2, 3, 1)).reshape(C1, KH * KW * Cin)
    w2_flat = jnp.transpose(w2, (0, 2, 3, 1)).reshape(C2, KH * KW * C1)
    w1_flat = w1_flat.astype(jnp.float32)
    w2_flat = w2_flat.astype(jnp.float32)
    b1c = b1.reshape(C1, 1).astype(jnp.float32)
    b2c = b2.reshape(C2, 1).astype(jnp.float32)

    kernel = functools.partial(_carrot_kernel, H=H, W=W, N=N)

    y1_flat, y2_flat = pl.pallas_call(
        kernel,
        out_shape=(jax.ShapeDtypeStruct((C1, NHW), x_nchw.dtype),
                   jax.ShapeDtypeStruct((C2, NHW), x_nchw.dtype)),
        grid_spec=pl.GridSpec(
            grid=(1,),                       # single fused invocation
            in_specs=[
                pl.BlockSpec((Cin, NHW), lambda i: (0, 0)),
                pl.BlockSpec((KH * KW, NHW), lambda i: (0, 0)),
                pl.BlockSpec((C1, KH * KW * Cin), lambda i: (0, 0)),
                pl.BlockSpec((C1, 1), lambda i: (0, 0)),
                pl.BlockSpec((C2, KH * KW * C1), lambda i: (0, 0)),
                pl.BlockSpec((C2, 1), lambda i: (0, 0)),
            ],
            out_specs=(
                pl.BlockSpec((C1, NHW), lambda i: (0, 0)),
                pl.BlockSpec((C2, NHW), lambda i: (0, 0)),
            ),
        ),
        compiler_params=pltpu.CompilerParams(
            dimension_semantics=("arbitrary",)),
    )(x_flat, masks, w1_flat, b1c, w2_flat, b2c)

    y1 = jnp.transpose(y1_flat.reshape(C1, N, H, W), (1, 0, 2, 3))
    y2 = jnp.transpose(y2_flat.reshape(C2, N, H, W), (1, 0, 2, 3))
    return (y1, y2)


def init_carrot_params(key):
    """Deterministic synthetic parameters matching Carrot.__init__ shapes.

    conv1: weight (9, 3, 3, 3), bias (9,)   [PyTorch OIHW]
    conv2: weight (9, 9, 3, 3), bias (9,)
    """
    k1, k2, k3, k4 = jax.random.split(key, 4)

    def conv_init(kw, kb, shape_oihw):
        fan_in = shape_oihw[1] * shape_oihw[2] * shape_oihw[3]
        bound = 1.0 / jnp.sqrt(jnp.float32(fan_in))
        w = jax.random.uniform(kw, shape_oihw, jnp.float32, -bound, bound)
        b = jax.random.uniform(kb, (shape_oihw[0],), jnp.float32, -bound, bound)
        return w, b

    w1, b1 = conv_init(k1, k2, (9, 3, 3, 3))
    w2, b2 = conv_init(k3, k4, (9, 9, 3, 3))
    return (w1, b1, w2, b2)


def _reference_forward(x_nchw, params):
    """Pure-XLA reference for correctness checking (NCHW / OIHW)."""
    w1, b1, w2, b2 = params
    dn = ("NCHW", "OIHW", "NCHW")
    hi = jax.lax.Precision.HIGHEST
    y1 = jax.lax.conv_general_dilated(x_nchw, w1, (1, 1), "SAME",
                                      dimension_numbers=dn, precision=hi)
    y1 = y1 + b1[None, :, None, None]
    y2 = jax.lax.conv_general_dilated(y1, w2, (1, 1), "SAME",
                                      dimension_numbers=dn, precision=hi)
    y2 = y2 + b2[None, :, None, None]
    return (y1, y2)


if __name__ == "__main__":
    key = jax.random.PRNGKey(0)
    kx, kp = jax.random.split(key)

    # Small input consistent with the module: batch=2, 3 channels, 16x16.
    x = jax.random.normal(kx, (2, 3, 16, 16), jnp.float32)
    params = init_carrot_params(kp)

    out1, out2 = carrot_forward(x, params)
    jax.block_until_ready((out1, out2))

    ref1, ref2 = _reference_forward(x, params)
    assert out1.shape == (2, 9, 16, 16) and out2.shape == (2, 9, 16, 16)
    assert jnp.allclose(out1, ref1, atol=1e-4, rtol=1e-5)
    assert jnp.allclose(out2, ref2, atol=1e-4, rtol=1e-5)

    print("KERNEL_OK")
</pallas_src>

<mosaic_0001>
module attributes {stable_mosaic.version = 11 : i64} {
  func.func @_carrot_kernel(%arg0: i32, %arg1: memref<3x512xf32, #tpu.memory_space<vmem>>, %arg2: memref<9x512xf32, #tpu.memory_space<vmem>>, %arg3: memref<9x27xf32, #tpu.memory_space<vmem>>, %arg4: memref<9x1xf32, #tpu.memory_space<vmem>>, %arg5: memref<9x81xf32, #tpu.memory_space<vmem>>, %arg6: memref<9x1xf32, #tpu.memory_space<vmem>>, %arg7: memref<9x512xf32, #tpu.memory_space<vmem>>, %arg8: memref<9x512xf32, #tpu.memory_space<vmem>>) attributes {dimension_semantics = [#tpu.dimension_semantics<arbitrary>], iteration_bounds = array<i64: 1>, scalar_prefetch = 0 : i64, scratch_operands = 0 : i64, tpu.core_type = #tpu.core_type<tc>, window_params = [{pipeline_mode = #tpu.pipeline_mode<synchronous>, transform_indices = @transform_0, window_bounds = array<i64: 3, 512>}, {pipeline_mode = #tpu.pipeline_mode<synchronous>, transform_indices = @transform_1, window_bounds = array<i64: 9, 512>}, {pipeline_mode = #tpu.pipeline_mode<synchronous>, transform_indices = @transform_2, window_bounds = array<i64: 9, 27>}, {pipeline_mode = #tpu.pipeline_mode<synchronous>, transform_indices = @transform_3, window_bounds = array<i64: 9, 1>}, {pipeline_mode = #tpu.pipeline_mode<synchronous>, transform_indices = @transform_4, window_bounds = array<i64: 9, 81>}, {pipeline_mode = #tpu.pipeline_mode<synchronous>, transform_indices = @transform_5, window_bounds = array<i64: 9, 1>}, {pipeline_mode = #tpu.pipeline_mode<synchronous>, transform_indices = @transform_6, window_bounds = array<i64: 9, 512>}, {pipeline_mode = #tpu.pipeline_mode<synchronous>, transform_indices = @transform_7, window_bounds = array<i64: 9, 512>}]} {
    %c0 = arith.constant 0 : index
    %c0_0 = arith.constant 0 : index
    %0 = vector.load %arg1[%c0, %c0_0] : memref<3x512xf32, #tpu.memory_space<vmem>>, vector<3x512xf32>
    %c17_i32 = arith.constant 17 : i32
    %1 = tpu.dynamic_rotate %0 by %c17_i32 dim 1 : vector<3x512xf32>, i32 -> vector<3x512xf32>
    %c0_1 = arith.constant 0 : index
    %c0_2 = arith.constant 0 : index
    %2 = vector.load %arg2[%c0_1, %c0_2] : memref<9x512xf32, #tpu.memory_space<vmem>>, vector<1x512xf32>
    %3 = vector.broadcast %2 : vector<1x512xf32> to vector<3x512xf32>
    %4 = arith.mulf %1, %3 : vector<3x512xf32>
    %c16_i32 = arith.constant 16 : i32
    %5 = tpu.dynamic_rotate %0 by %c16_i32 dim 1 : vector<3x512xf32>, i32 -> vector<3x512xf32>
    %c1 = arith.constant 1 : index
    %c0_3 = arith.constant 0 : index
    %6 = vector.load %arg2[%c1, %c0_3] : memref<9x512xf32, #tpu.memory_space<vmem>>, vector<1x512xf32>
    %7 = vector.broadcast %6 : vector<1x512xf32> to vector<3x512xf32>
    %8 = arith.mulf %5, %7 : vector<3x512xf32>
    %c15_i32 = arith.constant 15 : i32
    %9 = tpu.dynamic_rotate %0 by %c15_i32 dim 1 : vector<3x512xf32>, i32 -> vector<3x512xf32>
    %c2 = arith.constant 2 : index
    %c0_4 = arith.constant 0 : index
    %10 = vector.load %arg2[%c2, %c0_4] : memref<9x512xf32, #tpu.memory_space<vmem>>, vector<1x512xf32>
    %11 = vector.broadcast %10 : vector<1x512xf32> to vector<3x512xf32>
    %12 = arith.mulf %9, %11 : vector<3x512xf32>
    %c1_i32 = arith.constant 1 : i32
    %13 = tpu.dynamic_rotate %0 by %c1_i32 dim 1 : vector<3x512xf32>, i32 -> vector<3x512xf32>
    %c3 = arith.constant 3 : index
    %c0_5 = arith.constant 0 : index
    %14 = vector.load %arg2[%c3, %c0_5] : memref<9x512xf32, #tpu.memory_space<vmem>>, vector<1x512xf32>
    %15 = vector.broadcast %14 : vector<1x512xf32> to vector<3x512xf32>
    %16 = arith.mulf %13, %15 : vector<3x512xf32>
    %c4 = arith.constant 4 : index
    %c0_6 = arith.constant 0 : index
    %17 = vector.load %arg2[%c4, %c0_6] : memref<9x512xf32, #tpu.memory_space<vmem>>, vector<1x512xf32>
    %18 = vector.broadcast %17 : vector<1x512xf32> to vector<3x512xf32>
    %19 = arith.mulf %0, %18 : vector<3x512xf32>
    %c511_i32 = arith.constant 511 : i32
    %20 = tpu.dynamic_rotate %0 by %c511_i32 dim 1 : vector<3x512xf32>, i32 -> vector<3x512xf32>
    %c5 = arith.constant 5 : index
    %c0_7 = arith.constant 0 : index
    %21 = vector.load %arg2[%c5, %c0_7] : memref<9x512xf32, #tpu.memory_space<vmem>>, vector<1x512xf32>
    %22 = vector.broadcast %21 : vector<1x512xf32> to vector<3x512xf32>
    %23 = arith.mulf %20, %22 : vector<3x512xf32>
    %c497_i32 = arith.constant 497 : i32
    %24 = tpu.dynamic_rotate %0 by %c497_i32 dim 1 : vector<3x512xf32>, i32 -> vector<3x512xf32>
    %c6 = arith.constant 6 : index
    %c0_8 = arith.constant 0 : index
    %25 = vector.load %arg2[%c6, %c0_8] : memref<9x512xf32, #tpu.memory_space<vmem>>, vector<1x512xf32>
    %26 = vector.broadcast %25 : vector<1x512xf32> to vector<3x512xf32>
    %27 = arith.mulf %24, %26 : vector<3x512xf32>
    %c496_i32 = arith.constant 496 : i32
    %28 = tpu.dynamic_rotate %0 by %c496_i32 dim 1 : vector<3x512xf32>, i32 -> vector<3x512xf32>
    %c7 = arith.constant 7 : index
    %c0_9 = arith.constant 0 : index
    %29 = vector.load %arg2[%c7, %c0_9] : memref<9x512xf32, #tpu.memory_space<vmem>>, vector<1x512xf32>
    %30 = vector.broadcast %29 : vector<1x512xf32> to vector<3x512xf32>
    %31 = arith.mulf %28, %30 : vector<3x512xf32>
    %c495_i32 = arith.constant 495 : i32
    %32 = tpu.dynamic_rotate %0 by %c495_i32 dim 1 : vector<3x512xf32>, i32 -> vector<3x512xf32>
    %c8 = arith.constant 8 : index
    %c0_10 = arith.constant 0 : index
    %33 = vector.load %arg2[%c8, %c0_10] : memref<9x512xf32, #tpu.memory_space<vmem>>, vector<1x512xf32>
    %34 = vector.broadcast %33 : vector<1x512xf32> to vector<3x512xf32>
    %35 = arith.mulf %32, %34 : vector<3x512xf32>
    %36 = tpu.concatenate %4, %8, %12, %16, %19, %23, %27, %31, %35 in 0 : vector<3x512xf32>, vector<3x512xf32>, vector<3x512xf32>, vector<3x512xf32>, vector<3x512xf32>, vector<3x512xf32>, vector<3x512xf32>, vector<3x512xf32>, vector<3x512xf32> -> vector<27x512xf32>
    %c0_11 = arith.constant 0 : index
    %c0_12 = arith.constant 0 : index
    %37 = vector.load %arg3[%c0_11, %c0_12] : memref<9x27xf32, #tpu.memory_space<vmem>>, vector<9x27xf32>
    %cst = arith.constant dense<0.000000e+00> : vector<9x512xf32>
    %38 = tpu.matmul %37, %36, %cst {dimension_numbers = #tpu.dot_dimension_numbers<[1], [0], [0], [1], [0, 0, 1, 1], [], []>, precision = #tpu.contract_precision<fp32>} : vector<9x27xf32>, vector<27x512xf32>, vector<9x512xf32> -> vector<9x512xf32>
    %c0_13 = arith.constant 0 : index
    %c0_14 = arith.constant 0 : index
    %39 = vector.load %arg4[%c0_13, %c0_14] : memref<9x1xf32, #tpu.memory_space<vmem>>, vector<9x1xf32>
    %40 = vector.broadcast %39 : vector<9x1xf32> to vector<9x512xf32>
    %41 = arith.addf %38, %40 : vector<9x512xf32>
    %c0_15 = arith.constant 0 : index
    %c0_16 = arith.constant 0 : index
    %42 = vector.load %arg7[%c0_15, %c0_16] : memref<9x512xf32, #tpu.memory_space<vmem>>, vector<9x512xf32>
    tpu.vector_store %arg7[%c0_15, %c0_16], %41 {strides = array<i32>} : memref<9x512xf32, #tpu.memory_space<vmem>>, vector<9x512xf32>,
    %c17_i32_17 = arith.constant 17 : i32
    %43 = tpu.dynamic_rotate %41 by %c17_i32_17 dim 1 : vector<9x512xf32>, i32 -> vector<9x512xf32>
    %c0_18 = arith.constant 0 : index
    %c0_19 = arith.constant 0 : index
    %44 = vector.load %arg2[%c0_18, %c0_19] : memref<9x512xf32, #tpu.memory_space<vmem>>, vector<1x512xf32>
    %45 = vector.broadcast %44 : vector<1x512xf32> to vector<9x512xf32>
    %46 = arith.mulf %43, %45 : vector<9x512xf32>
    %c16_i32_20 = arith.constant 16 : i32
    %47 = tpu.dynamic_rotate %41 by %c16_i32_20 dim 1 : vector<9x512xf32>, i32 -> vector<9x512xf32>
    %c1_21 = arith.constant 1 : index
    %c0_22 = arith.constant 0 : index
    %48 = vector.load %arg2[%c1_21, %c0_22] : memref<9x512xf32, #tpu.memory_space<vmem>>, vector<1x512xf32>
    %49 = vector.broadcast %48 : vector<1x512xf32> to vector<9x512xf32>
    %50 = arith.mulf %47, %49 : vector<9x512xf32>
    %c15_i32_23 = arith.constant 15 : i32
    %51 = tpu.dynamic_rotate %41 by %c15_i32_23 dim 1 : vector<9x512xf32>, i32 -> vector<9x512xf32>
    %c2_24 = arith.constant 2 : index
    %c0_25 = arith.constant 0 : index
    %52 = vector.load %arg2[%c2_24, %c0_25] : memref<9x512xf32, #tpu.memory_space<vmem>>, vector<1x512xf32>
    %53 = vector.broadcast %52 : vector<1x512xf32> to vector<9x512xf32>
    %54 = arith.mulf %51, %53 : vector<9x512xf32>
    %c1_i32_26 = arith.constant 1 : i32
    %55 = tpu.dynamic_rotate %41 by %c1_i32_26 dim 1 : vector<9x512xf32>, i32 -> vector<9x512xf32>
    %c3_27 = arith.constant 3 : index
    %c0_28 = arith.constant 0 : index
    %56 = vector.load %arg2[%c3_27, %c0_28] : memref<9x512xf32, #tpu.memory_space<vmem>>, vector<1x512xf32>
    %57 = vector.broadcast %56 : vector<1x512xf32> to vector<9x512xf32>
    %58 = arith.mulf %55, %57 : vector<9x512xf32>
    %c4_29 = arith.constant 4 : index
    %c0_30 = arith.constant 0 : index
    %59 = vector.load %arg2[%c4_29, %c0_30] : memref<9x512xf32, #tpu.memory_space<vmem>>, vector<1x512xf32>
    %60 = vector.broadcast %59 : vector<1x512xf32> to vector<9x512xf32>
    %61 = arith.mulf %41, %60 : vector<9x512xf32>
    %c511_i32_31 = arith.constant 511 : i32
    %62 = tpu.dynamic_rotate %41 by %c511_i32_31 dim 1 : vector<9x512xf32>, i32 -> vector<9x512xf32>
    %c5_32 = arith.constant 5 : index
    %c0_33 = arith.constant 0 : index
    %63 = vector.load %arg2[%c5_32, %c0_33] : memref<9x512xf32, #tpu.memory_space<vmem>>, vector<1x512xf32>
    %64 = vector.broadcast %63 : vector<1x512xf32> to vector<9x512xf32>
    %65 = arith.mulf %62, %64 : vector<9x512xf32>
    %c497_i32_34 = arith.constant 497 : i32
    %66 = tpu.dynamic_rotate %41 by %c497_i32_34 dim 1 : vector<9x512xf32>, i32 -> vector<9x512xf32>
    %c6_35 = arith.constant 6 : index
    %c0_36 = arith.constant 0 : index
    %67 = vector.load %arg2[%c6_35, %c0_36] : memref<9x512xf32, #tpu.memory_space<vmem>>, vector<1x512xf32>
    %68 = vector.broadcast %67 : vector<1x512xf32> to vector<9x512xf32>
    %69 = arith.mulf %66, %68 : vector<9x512xf32>
    %c496_i32_37 = arith.constant 496 : i32
    %70 = tpu.dynamic_rotate %41 by %c496_i32_37 dim 1 : vector<9x512xf32>, i32 -> vector<9x512xf32>
    %c7_38 = arith.constant 7 : index
    %c0_39 = arith.constant 0 : index
    %71 = vector.load %arg2[%c7_38, %c0_39] : memref<9x512xf32, #tpu.memory_space<vmem>>, vector<1x512xf32>
    %72 = vector.broadcast %71 : vector<1x512xf32> to vector<9x512xf32>
    %73 = arith.mulf %70, %72 : vector<9x512xf32>
    %c495_i32_40 = arith.constant 495 : i32
    %74 = tpu.dynamic_rotate %41 by %c495_i32_40 dim 1 : vector<9x512xf32>, i32 -> vector<9x512xf32>
    %c8_41 = arith.constant 8 : index
    %c0_42 = arith.constant 0 : index
    %75 = vector.load %arg2[%c8_41, %c0_42] : memref<9x512xf32, #tpu.memory_space<vmem>>, vector<1x512xf32>
    %76 = vector.broadcast %75 : vector<1x512xf32> to vector<9x512xf32>
    %77 = arith.mulf %74, %76 : vector<9x512xf32>
    %78 = tpu.concatenate %46, %50, %54, %58, %61, %65, %69, %73, %77 in 0 : vector<9x512xf32>, vector<9x512xf32>, vector<9x512xf32>, vector<9x512xf32>, vector<9x512xf32>, vector<9x512xf32>, vector<9x512xf32>, vector<9x512xf32>, vector<9x512xf32> -> vector<81x512xf32>
    %c0_43 = arith.constant 0 : index
    %c0_44 = arith.constant 0 : index
    %79 = vector.load %arg5[%c0_43, %c0_44] : memref<9x81xf32, #tpu.memory_space<vmem>>, vector<9x81xf32>
    %cst_45 = arith.constant dense<0.000000e+00> : vector<9x512xf32>
    %80 = tpu.matmul %79, %78, %cst_45 {dimension_numbers = #tpu.dot_dimension_numbers<[1], [0], [0], [1], [0, 0, 1, 1], [], []>, precision = #tpu.contract_precision<fp32>} : vector<9x81xf32>, vector<81x512xf32>, vector<9x512xf32> -> vector<9x512xf32>
    %c0_46 = arith.constant 0 : index
    %c0_47 = arith.constant 0 : index
    %81 = vector.load %arg6[%c0_46, %c0_47] : memref<9x1xf32, #tpu.memory_space<vmem>>, vector<9x1xf32>
    %82 = vector.broadcast %81 : vector<9x1xf32> to vector<9x512xf32>
    %83 = arith.addf %80, %82 : vector<9x512xf32>
    %c0_48 = arith.constant 0 : index
    %c0_49 = arith.constant 0 : index
    %84 = vector.load %arg8[%c0_48, %c0_49] : memref<9x512xf32, #tpu.memory_space<vmem>>, vector<9x512xf32>
    tpu.vector_store %arg8[%c0_48, %c0_49], %83 {strides = array<i32>} : memref<9x512xf32, #tpu.memory_space<vmem>>, vector<9x512xf32>,
    return
  }
  func.func @transform_0(%arg0: i32) -> (i32, i32) {
    %c0_i32 = arith.constant 0 : i32
    %c0_i32_0 = arith.constant 0 : i32
    %c0_i32_1 = arith.constant 0 : i32
    return %c0_i32, %c0_i32_0 : i32, i32
  }
  func.func @transform_1(%arg0: i32) -> (i32, i32) {
    %c0_i32 = arith.constant 0 : i32
    %c0_i32_0 = arith.constant 0 : i32
    %c0_i32_1 = arith.constant 0 : i32
    return %c0_i32, %c0_i32_0 : i32, i32
  }
  func.func @transform_2(%arg0: i32) -> (i32, i32) {
    %c0_i32 = arith.constant 0 : i32
    %c0_i32_0 = arith.constant 0 : i32
    %c0_i32_1 = arith.constant 0 : i32
    return %c0_i32, %c0_i32_0 : i32, i32
  }
  func.func @transform_3(%arg0: i32) -> (i32, i32) {
    %c0_i32 = arith.constant 0 : i32
    %c0_i32_0 = arith.constant 0 : i32
    %c0_i32_1 = arith.constant 0 : i32
    return %c0_i32, %c0_i32_0 : i32, i32
  }
  func.func @transform_4(%arg0: i32) -> (i32, i32) {
    %c0_i32 = arith.constant 0 : i32
    %c0_i32_0 = arith.constant 0 : i32
    %c0_i32_1 = arith.constant 0 : i32
    return %c0_i32, %c0_i32_0 : i32, i32
  }
  func.func @transform_5(%arg0: i32) -> (i32, i32) {
    %c0_i32 = arith.constant 0 : i32
    %c0_i32_0 = arith.constant 0 : i32
    %c0_i32_1 = arith.constant 0 : i32
    return %c0_i32, %c0_i32_0 : i32, i32
  }
  func.func @transform_6(%arg0: i32) -> (i32, i32) {
    %c0_i32 = arith.constant 0 : i32
    %c0_i32_0 = arith.constant 0 : i32
    %c0_i32_1 = arith.constant 0 : i32
    return %c0_i32, %c0_i32_0 : i32, i32
  }
  func.func @transform_7(%arg0: i32) -> (i32, i32) {
    %c0_i32 = arith.constant 0 : i32
    %c0_i32_0 = arith.constant 0 : i32
    %c0_i32_1 = arith.constant 0 : i32
    return %c0_i32, %c0_i32_0 : i32, i32
  }
}

</mosaic_0001>

<bundles_post_ra>
// kernel: carrot_forward.1
= control target key start
LH: loop header
LB: loop body
LE: loop exit
PB: predicated region body
PF: predicated region fallthrough
CT: control target
= control target key end

     0   :  { %s3271_s28 = smov 17   ;;  %s3273_s29 = smov 15   ;;  %vm195_vm0 = vcmask 1043456   ;;  %v48_v53 = vlaneseq  ;;  %vm492_vm6 = vcmask 220160   ;;  %vm444_vm7 = vcmask 1042432   ;;  %s5666_s0 = inlined_call_operand.vmem [shape: f32[3,512], index: 0, kind: input, shape index: {}]   ;;  %s5667_s1 = inlined_call_operand.vmem [shape: f32[9,512], index: 1, kind: input, shape index: {}]   ;;  %s5668_s2 = inlined_call_operand.vmem [shape: f32[9,27], index: 2, kind: input, shape index: {}]   ;;  %s5669_s3 = inlined_call_operand.vmem [shape: f32[9,1], index: 3, kind: input, shape index: {}]   ;;  %s5670_s6 = inlined_call_operand.vmem [shape: f32[9,512], index: 6, kind: output, shape index: {0}]   ;;  %s5671_s5 = inlined_call_operand.vmem [shape: f32[9,1], index: 5, kind: input, shape index: {}]   ;;  %s5672_s4 = inlined_call_operand.vmem [shape: f32[9,81], index: 4, kind: input, shape index: {}]   ;;  %s5673_s7 = inlined_call_operand.vmem [shape: f32[9,512], index: 7, kind: output, shape index: {1}]  }
   0x1   :  { %v3323_v0 = vld [vmem:[%s5666_s0 + $0x8] sm:$0x77]  ;;  %v3328_v1 = vld [vmem:[%s5666_s0] sm:$0x77]  ;;  %s3272_s0 = smov 16   ;;  %s3274_s30 = smov 1  }
   0x2   :  { %31 = vst [vmem:[#allocation1 + $0x10] ss:$2 sm:$0xff] %v3323_v0  ;;  %s3275_s8 = smov 127   ;;  %s3276_s9 = smov 113   ;;  %v3412_v55 = vand.u32 127, %v48_v53  ;;  %vm454_vm10 = vcmask 1040384  }
   0x3   :  { %29 = vst [vmem:[#allocation1] ss:$2 sm:$0xff] %v3328_v1  ;;  %s3277_s10 = smov 112   ;;  %s3278_s11 = smov 111   ;;  %vm449_vm11 = vcmask 1045504   ;;  %vm463_vm12 = vcmask 1046528  }
   0x4   :  { %v3241_v34 = vld [vmem:[%s5667_s1 + $0x4] ss:$8 sm:$0xf]  ;;  %v3421_v58 = vld [vmem:[%s5667_s1 + $0x1] ss:$8 sm:$0xf] }
   0x5   :  { %v190_v35 = vperm.slane %v3241_v34, 1  ;;  %v189_v36 = vperm.slane %v3241_v34, 0  ;;  %v191_v41 = vperm.slane %v3241_v34, 2  ;;  %v192_v42 = vperm.slane %v3241_v34, 3 }
   0x6   :  { %vm88_vm1 = vcmp.lt.s32.totalorder %v3412_v55, 16  ;;  %v3427_v59 = vld [vmem:[%s5667_s1 + $0x3] ss:$8 sm:$0xf]  ;;  %v96_v60 = vperm.slane %v3421_v58, 0  ;;  %vm166_vm2 = vcmp.lt.s32.totalorder %v3412_v55, 1 }
   0x7   :  { %v193_v37 = vrot.slane %v190_v35, 4  ;;  %v194_v43 = vrot.slane %v192_v42, 4  ;;  %v3433_v61 = vld [vmem:[%s5667_s1 + $0x2] ss:$8 sm:$0xf]  ;;  %vm127_vm3 = vcmp.lt.s32.totalorder %v3412_v55, 15 }
   0x8   :  { %v3439_v62 = vld [vmem:[%s5667_s1] ss:$8 sm:$0xf]  ;;  %vm50_vm4 = vcmp.lt.s32.totalorder %v3412_v55, 17  ;;  %vm221_vm5 = vcmp.lt.s32.totalorder %v3412_v55, 127  ;;  %vm260_vm8 = vcmp.lt.s32.totalorder %v3412_v55, 113 }
   0x9   :  { %v35_v2 = vld.sshfl [vmem:[#allocation1 + $0x18] sm:$0xff pattern:$0x75316420]  ;;  %v3332_v3 = vld.sshfl [vmem:[#allocation1 + $0x10] sm:$0xff pattern:$0x75316420]  ;;  %v196_v39 = vsel %vm195_vm0, %v189_v36, %v193_v37  ;;  %v197_v44 = vsel %vm195_vm0, %v191_v41, %v194_v43 }
   0xa   :  { %46 = vrot.lane.b32.xlu0 %v35_v2, %s3271_s28  ;;  %71 = vst [vmem:[#allocation1 + $0x10] ss:$2 sm:$0xff] %v3323_v0  ;;  %v32_v4 = vld.sshfl [vmem:[#allocation1] sm:$0xff pattern:$0x75316420]  ;;  %v200_v40 = vmul.f32 %v196_v39, %v3328_v1  ;;  %v201_v46 = vmul.f32 %v197_v44, %v3323_v0  ;;  %v135_v2 = vperm.slane %v3433_v61, 0 }
   0xb   :  { %v3336_v5 = vld.sshfl [vmem:[#allocation1 + $0x8] sm:$0xff pattern:$0x75316420]  ;;  %40 = vrot.lane.b32.xlu2 %v32_v4, %s3271_s28  ;;  %vm299_vm9 = vcmp.lt.s32.totalorder %v3412_v55, 112  ;;  %vm468_vm13 = vcmask 1041408   ;;  %vm473_vm14 = vcmask 1044480  }
   0xc   :  { %69 = vst [vmem:[#allocation1] ss:$2 sm:$0xff] %v3328_v1  ;;  %v479_v36 = vld [vmem:[%s5668_s2 + $0x8] sm:$0x1]  ;;  %vm338_vm15 = vcmp.lt.s32.totalorder %v3412_v55, 111 }
   0xd   :  { %v497_v44 = vsel %vm492_vm6, %v479_v36, 0 }
  0x11   :  { %v75_v6 = vld.sshfl [vmem:[#allocation1 + $0x18] sm:$0xff pattern:$0x75316420]  ;;  %v3340_v7 = vld.sshfl [vmem:[#allocation1 + $0x10] sm:$0xff pattern:$0x75316420] }
  0x12   :  { %86 = vrot.lane.b32.xlu1 %v75_v6, %s3272_s0  ;;  %110 = vst [vmem:[#allocation1 + $0x10] ss:$2 sm:$0xff] %v3323_v0  ;;  %v57_v6 = vperm.slane %v3439_v62, 0 }
  0x13   :  { %v72_v8 = vld.sshfl [vmem:[#allocation1] sm:$0xff pattern:$0x75316420]  ;;  %v73_v9 = vld.sshfl [vmem:[#allocation1 + $0x8] sm:$0xff pattern:$0x75316420] }
  0x14   :  { %80 = vrot.lane.b32.xlu0 %v72_v8, %s3272_s0  ;;  %108 = vst [vmem:[#allocation1] ss:$2 sm:$0xff] %v3328_v1 }
  0x19   :  { %v113_v10 = vld.sshfl [vmem:[#allocation1 + $0x10] sm:$0xff pattern:$0x75316420]  ;;  %v114_v11 = vld.sshfl [vmem:[#allocation1 + $0x18] sm:$0xff pattern:$0x75316420] }
  0x1a   :  { %149 = vst [vmem:[#allocation1 + $0x10] ss:$2 sm:$0xff] %v3323_v0 }
  0x1b   :  { %v111_v12 = vld.sshfl [vmem:[#allocation1] sm:$0xff pattern:$0x75316420]  ;;  %v112_v13 = vld.sshfl [vmem:[#allocation1 + $0x8] sm:$0xff pattern:$0x75316420] }
  0x1c   :  { %147 = vst [vmem:[#allocation1] ss:$2 sm:$0xff] %v3328_v1  ;;  %119 = vrot.lane.b32.xlu2 %v111_v12, %s3273_s29 }
  0x21   :  { %v153_v14 = vld.sshfl [vmem:[#allocation1 + $0x18] sm:$0xff pattern:$0x75316420]  ;;  %v152_v15 = vld.sshfl [vmem:[#allocation1 + $0x10] sm:$0xff pattern:$0x75316420] }
  0x22   :  { %164 = vrot.lane.b32.xlu1 %v153_v14, %s3274_s30  ;;  %204 = vst [vmem:[#allocation1 + $0x10] ss:$2 sm:$0xff] %v3323_v0  ;;  %v3483_v14 = vld [vmem:[%s5667_s1 + $0x7] ss:$8 sm:$0xf] }
  0x23   :  { %v150_v16 = vld.sshfl [vmem:[#allocation1] sm:$0xff pattern:$0x75316420]  ;;  %v151_v17 = vld.sshfl [vmem:[#allocation1 + $0x8] sm:$0xff pattern:$0x75316420] }
  0x24   :  { %158 = vrot.lane.b32.xlu0 %v150_v16, %s3274_s30  ;;  %202 = vst [vmem:[#allocation1] ss:$2 sm:$0xff] %v3328_v1  ;;  %125 = vrot.lane.b32.xlu2 %v114_v11, %s3273_s29 }
  0x29   :  { %v207_v18 = vld.sshfl [vmem:[#allocation1 + $0x10] sm:$0xff pattern:$0x75316420]  ;;  %v208_v19 = vld.sshfl [vmem:[#allocation1 + $0x18] sm:$0xff pattern:$0x75316420] }
  0x2a   :  { %243 = vst [vmem:[#allocation1 + $0x10] ss:$2 sm:$0xff] %v3323_v0 }
  0x2b   :  { %v205_v20 = vld.sshfl [vmem:[#allocation1] sm:$0xff pattern:$0x75316420]  ;;  %v206_v21 = vld.sshfl [vmem:[#allocation1 + $0x8] sm:$0xff pattern:$0x75316420] }
  0x2c   :  { %213 = vrot.lane.b32.xlu0 %v205_v20, %s3275_s8  ;;  %241 = vst [vmem:[#allocation1] ss:$2 sm:$0xff] %v3328_v1 }
  0x31   :  { %v246_v22 = vld.sshfl [vmem:[#allocation1 + $0x10] sm:$0xff pattern:$0x75316420]  ;;  %v247_v23 = vld.sshfl [vmem:[#allocation1 + $0x18] sm:$0xff pattern:$0x75316420] }
  0x32   :  { %282 = vst [vmem:[#allocation1 + $0x10] ss:$2 sm:$0xff] %v3323_v0 }
  0x33   :  { %v244_v24 = vld.sshfl [vmem:[#allocation1] sm:$0xff pattern:$0x75316420]  ;;  %v245_v25 = vld.sshfl [vmem:[#allocation1 + $0x8] sm:$0xff pattern:$0x75316420] }
  0x34   :  { %215 = vrot.lane.b32.xlu0 %v206_v21, %s3275_s8  ;;  %252 = vrot.lane.b32.xlu1 %v244_v24, %s3276_s9  ;;  %280 = vst [vmem:[#allocation1] ss:$2 sm:$0xff] %v3328_v1  ;;  %v307_v21 = vperm.slane %v3483_v14, 0 }
  0x39   :  { %v285_v26 = vld.sshfl [vmem:[#allocation1 + $0x10] sm:$0xff pattern:$0x75316420]  ;;  %v286_v27 = vld.sshfl [vmem:[#allocation1 + $0x18] sm:$0xff pattern:$0x75316420] }
  0x3a   :  { %321 = vst [vmem:[#allocation1 + $0x10] ss:$2 sm:$0xff] %v3323_v0  ;;  %v174_v0 = vperm.slane %v3427_v59, 0 }
  0x3b   :  { %v284_v28 = vld.sshfl [vmem:[#allocation1 + $0x8] sm:$0xff pattern:$0x75316420]  ;;  %v283_v29 = vld.sshfl [vmem:[#allocation1] sm:$0xff pattern:$0x75316420] }
  0x3c   :  { %254 = vrot.lane.b32.xlu1 %v245_v25, %s3276_s9  ;;  %293 = vrot.lane.b32.xlu0 %v284_v28, %s3277_s10  ;;  %319 = vst [vmem:[#allocation1] ss:$2 sm:$0xff] %v3328_v1  ;;  %v3451_v1 = vld [vmem:[%s5667_s1 + $0x5] ss:$8 sm:$0xf] }
  0x3d   :  { %291 = vrot.lane.b32.xlu2 %v283_v29, %s3277_s10  ;;  %v229_v11 = vperm.slane %v3451_v1, 0 }
  0x41   :  { %v324_v32 = vld.sshfl [vmem:[#allocation1 + $0x10] sm:$0xff pattern:$0x75316420]  ;;  %v325_v33 = vld.sshfl [vmem:[#allocation1 + $0x18] sm:$0xff pattern:$0x75316420] }
  0x42   :  { %399 = vst [vmem:[#allocation1 + $0x11] ss:$2 sm:$0xff] %v201_v46 }
  0x43   :  { %v323_v30 = vld.sshfl [vmem:[#allocation1 + $0x8] sm:$0xff pattern:$0x75316420]  ;;  %v322_v31 = vld.sshfl [vmem:[#allocation1] sm:$0xff pattern:$0x75316420] }
  0x44   :  { %121 = vrot.lane.b32.xlu0 %v112_v13, %s3273_s29  ;;  %330 = vrot.lane.b32.xlu1 %v322_v31, %s3278_s11  ;;  %397 = vst [vmem:[#allocation1 + $0x1] ss:$2 sm:$0xff] %v200_v40  ;;  %v3478_v13 = vld [vmem:[%s5667_s1 + $0x6] ss:$8 sm:$0xf] }
  0x45   :  { %332 = vrot.lane.b32.xlu2 %v323_v30, %s3278_s11  ;;  %v268_v20 = vperm.slane %v3478_v13, 0  ;;  %v3515_v40 = vld [vmem:[%s5667_s1 + $0x20] ss:$8 sm:$0xf] }
  0x4c   :  { %334 = vrot.lane.b32.xlu0 %v324_v32, %s3278_s11  ;;  %217 = vrot.lane.b32.xlu1 %v207_v18, %s3275_s8  ;;  %v400_v32 = vld.sshfl [vmem:[#allocation1] sm:$0xff pattern:$0x75316420] }
  0x4d   :  { %256 = vrot.lane.b32.xlu2 %v246_v22, %s3276_s9 }
  0x54   :  { %219 = vrot.lane.b32.xlu0 %v208_v19, %s3275_s8  ;;  %160 = vrot.lane.b32.xlu1 %v151_v17, %s3274_s30  ;;  %v478_v17 = vld [vmem:[%s5668_s2] sm:$0xff] }
  0x55   :  { %295 = vrot.lane.b32.xlu2 %v285_v26, %s3277_s10  ;;  %v494_v24 = vsel %vm492_vm6, %v478_v17, 0  ;;  %vm1975_vm6 = vcmask 662528  }
  0x56   :  { %v3506_v35 = vand.u32 4294901760, %v494_v24 }
  0x5c   :  { %162 = vrot.lane.b32.xlu0 %v152_v15, %s3274_s30  ;;  %82 = vrot.lane.b32.xlu1 %v73_v9, %s3272_s0 }
  0x5d   :  { %42 = vrot.lane.b32.xlu2 %v3336_v5, %s3271_s28 }
  0x64   :  { %84 = vrot.lane.b32.xlu0 %v3340_v7, %s3272_s0  ;;  %258 = vrot.lane.b32.xlu1 %v247_v23, %s3276_s9 }
  0x65   :  { %123 = vrot.lane.b32.xlu2 %v113_v10, %s3273_s29  ;;  %v3390_v38 = vpop.permute.xlu2 %40 }
  0x6c   :  { %297 = vrot.lane.b32.xlu1 %v286_v27, %s3277_s10 }
  0x6d   :  { %336 = vrot.lane.b32.xlu2 %v325_v33, %s3278_s11 }
  0x74   :  { %44 = vrot.lane.b32.xlu1 %v3332_v3, %s3271_s28 }
  0x76   :  { %v3398_v47 = vpop.permute.xlu2 %119 }
  0x7c   :  { %v3395_v45 = vpop.permute.xlu0 %46 }
  0x7d   :  { %v54_v10 = vsel %vm50_vm4, %v3395_v45, %v3390_v38 }
  0x7e   :  { %v3402_v49 = vpop.permute.xlu2 %125  ;;  %v65_v18 = vmul.f32 %v57_v6, %v54_v10  ;;  %v3536_v10 = vand.u32 4294901760, %v497_v44 }
  0x7f   :  { %v131_v8 = vsel %vm127_vm3, %v3402_v49, %v3398_v47 }
  0x80   :  { %v143_v15 = vmul.f32 %v135_v2, %v131_v8 }
  0x82   :  { %v374_v25 = vrot.slane %v143_v15, 2 }
  0x84   :  { %v3404_v50 = vpop.permute.xlu1 %86 }
  0x86   :  { %v3400_v48 = vpop.permute.xlu0 %80 }
  0x87   :  { %v92_v63 = vsel %vm88_vm1, %v3404_v50, %v3400_v48 }
  0x88   :  { %v104_v7 = vmul.f32 %v96_v60, %v92_v63  ;;  %v346_v60 = vperm.slane %v3515_v40, 0  ;;  %v3524_v63 = vsub.f32 %v494_v24, %v3506_v35  ;;  %v3561_v24 = vsub.f32 %v497_v44, %v3536_v10 }
  0x8a   :  { %v362_v19 = vrot.slane %v104_v7, 5 }
  0x8c   :  { %v445_v28 = vsel %vm444_vm7, %v65_v18, %v362_v19  ;;  %v3550_v19 = vand.u32 4294901760, %v3524_v63 }
  0x8d   :  { %v450_v41 = vsel %vm449_vm11, %v445_v28, %v374_v25  ;;  %v308_v28 = vperm.slane %v3483_v14, 1 }
  0x8e   :  { %v534_v36 = vsub.f32 %v3524_v63, %v3550_v19 }
  0x94   :  { %v3410_v54 = vpop.permute.xlu1 %164 }
  0x96   :  { %v3406_v51 = vpop.permute.xlu0 %158 }
  0x97   :  { %v3408_v52 = vpop.permute.xlu2 %291  ;;  %v170_v3 = vsel %vm166_vm2, %v3410_v54, %v3406_v51 }
  0x98   :  { %v182_v12 = vmul.f32 %v174_v0, %v170_v3  ;;  %v3528_v3 = vand.u32 4294901760, %v450_v41 }
  0x9a   :  { %v386_v22 = vrot.slane %v182_v12, 7  ;;  %v480_v12 = vld [vmem:[%s5669_s3] sm:$0xff] }
  0x9c   :  { %v455_v37 = vsel %vm454_vm10, %v374_v25, %v386_v22 }
  0x9d   :  { %v459_v46 = vsel %vm195_vm0, %v455_v37, %v400_v32 }
  0x9e   :  { %v3414_v56 = vpop.permute.xlu0 %213 }
  0x9f   :  { %v3416_v57 = vpop.permute.xlu2 %332 }
  0xa6   :  { %v3458_v4 = vpop.permute.xlu0 %215  ;;  %v3460_v5 = vpop.permute.xlu1 %252 }
  0xa7   :  { %v3468_v9 = vpop.permute.xlu2 %256  ;;  %v224_v16 = vsel %vm221_vm5, %v3414_v56, %v3458_v4 }
  0xa8   :  { %v237_v23 = vmul.f32 %v229_v11, %v224_v16  ;;  %v3279_v11 = vmov 0  }
  0xa9   :  { %3264 = vset.pattern.permute.xlu0 %v3279_v11  ;;  %3263 = vset.pattern.permute.xlu2 %v3279_v11 }
  0xaa   :  { %v412_v39 = vrot.slane %v237_v23, 1  ;;  %484 = vperm.xlu0 %3264, %v480_v12   ;;  %3265 = vset.pattern.permute.xlu1 %v3279_v11  ;;  %v3602_v12 = vand.u32 4294901760, %v534_v36 }
  0xac   :  { %v464_v0 = vsel %vm463_vm12, %v459_v46, %v412_v39 }
  0xad   :  { %v3547_v18 = vand.u32 4294901760, %v464_v0 }
  0xae   :  { %v255_v26 = vpop.permute.xlu1 %254  ;;  %v294_v27 = vpop.permute.xlu0 %293 }
  0xaf   :  { %v263_v29 = vsel %vm260_vm8, %v3460_v5, %v255_v26  ;;  %v302_v30 = vsel %vm299_vm9, %v3408_v52, %v294_v27  ;;  %v3504_v31 = vpop.permute.xlu2 %295  ;;  %v262_v25 = vsel %vm260_vm8, %v255_v26, %v3468_v9 }
  0xb0   :  { %v276_v33 = vmul.f32 %v268_v20, %v263_v29  ;;  %v315_v34 = vmul.f32 %v307_v21, %v302_v30  ;;  %v3553_v20 = vsub.f32 %v450_v41, %v3528_v3  ;;  %v269_v21 = vperm.slane %v3478_v13, 1 }
  0xb1   :  { %v347_v30 = vperm.slane %v3515_v40, 1  ;;  %v301_v32 = vsel %vm299_vm9, %v294_v27, %v3504_v31 }
  0xb2   :  { %v424_v42 = vrot.slane %v276_v33, 6  ;;  %v436_v43 = vrot.slane %v315_v34, 3  ;;  %v230_v33 = vperm.slane %v3451_v1, 1  ;;  %v3575_v34 = vsub.f32 %v464_v0, %v3547_v18 }
  0xb3   :  { %v5675_v37 = vand.u32 4294901760, %v3553_v20  ;;  %v316_v44 = vmul.f32 %v308_v28, %v301_v32 }
  0xb4   :  { %v469_v53 = vsel %vm468_vm13, %v412_v39, %v424_v42  ;;  %v277_v39 = vmul.f32 %v269_v21, %v262_v25 }
  0xb5   :  { %v474_v2 = vsel %vm473_vm14, %v469_v53, %v436_v43  ;;  %v3587_v43 = vand.u32 4294901760, %v3561_v24 }
  0xb6   :  { %v3530_v6 = vpop.permute.xlu0 %121  ;;  %v3532_v7 = vpop.permute.xlu1 %330  ;;  %v3534_v8 = vand.u32 4294901760, %v474_v2  ;;  %v425_v21 = vrot.slane %v277_v39, 6 }
  0xb7   :  { %v3541_v15 = vpop.permute.xlu2 %42  ;;  %v341_v16 = vsel %vm338_vm15, %v3532_v7, %v3416_v57  ;;  %v542_v36 = vsub.f32 %v3561_v24, %v3587_v43 }
  0xb8   :  { %v354_v17 = vmul.f32 %v346_v60, %v341_v16  ;;  %v3558_v23 = vsub.f32 %v474_v2, %v3534_v8  ;;  %v136_v16 = vperm.slane %v3433_v61, 1 }
  0xba   :  { %v500_v22 = vsel %vm444_vm7, %v354_v17, 0  ;;  %v568_v27 = vand.u32 4294901760, %v3558_v23  ;;  %v3611_v17 = vsub.f32 %v3553_v20, %v5675_v37 }
  0xbb   :  { %v3567_v29 = vand.u32 4294901760, %v500_v22 }
  0xbc   :  { %v569_v28 = vsub.f32 %v3558_v23, %v568_v27 }
  0xbd   :  { %524 = vmatpush.msra.mxu0 %v3567_v29  ;;  %641 = vmatpush.msra.mxu3 %v3567_v29  ;;  %v561_v26 = vsub.f32 %v500_v22, %v3567_v29 }
  0xbe   :  { %v335_v41 = vpop.permute.xlu0 %334  ;;  %v3583_v42 = vpop.permute.xlu1 %217 }
  0xbf   :  { %v340_v46 = vsel %vm338_vm15, %v3416_v57, %v335_v41  ;;  %v3592_v53 = vpop.permute.xlu2 %123  ;;  %v223_v60 = vsel %vm221_vm5, %v3458_v4, %v3583_v42  ;;  %526 = vmatpush.msra.mxu0 %v3534_v8  ;;  %607 = vmatpush.msra.mxu2 %v561_v26  ;;  %v562_v0 = vand.u32 4294901760, %v561_v26  ;;  %v574_v57 = vand.u32 4294901760, %v3575_v34 }
  0xc0   :  { %v355_v2 = vmul.f32 %v347_v30, %v340_v46  ;;  %v3599_v11 = vmul.f32 %v230_v33, %v223_v60  ;;  %643 = vmatpush.msra.mxu3 %v3534_v8  ;;  %v437_v30 = vrot.slane %v316_v44, 3  ;;  %v348_v46 = vperm.slane %v3515_v40, 2 }
  0xc1   :  { %528 = vmatpush.msra.mxu0 %v3547_v18  ;;  %610 = vmatpush.msra.mxu2 %v3558_v23  ;;  %v563_v4 = vsub.f32 %v561_v26, %v562_v0  ;;  %v130_v26 = vsel %vm127_vm3, %v3398_v47, %v3530_v6  ;;  %v575_v39 = vsub.f32 %v3575_v34, %v574_v57  ;;  %v175_v60 = vperm.slane %v3427_v59, 1 }
  0xc2   :  { %v503_v22 = vsel %vm444_vm7, %v355_v2, 0  ;;  %v5674_v25 = vrot.slane %v3599_v11, 1  ;;  %645 = vmatpush.msra.mxu3 %v3547_v18 }
  0xc3   :  { %v3617_v32 = vand.u32 4294901760, %v503_v22  ;;  %530 = vmatpush.msra.mxu0 %v3528_v3  ;;  %613 = vmatpush.msra.mxu2 %v3575_v34  ;;  %v564_v33 = vand.u32 4294901760, %v563_v4 }
  0xc4   :  { %v470_v23 = vsel %vm468_vm13, %v5674_v25, %v425_v21  ;;  %647 = vmatpush.msra.mxu3 %v3528_v3  ;;  %536 = vmatmul.f32.vlgmr.msra.gmra.mxu0 %v3602_v12  ;;  %v570_v25 = vand.u32 4294901760, %v569_v28 }
  0xc5   :  { %v3634_v44 = vsub.f32 %v503_v22, %v3617_v32  ;;  %676 = vmatpush.msrb.mxu0 %v562_v0  ;;  %565 = vmatpush.msra.mxu1 %v564_v33  ;;  %v475_v47 = vsel %vm473_vm14, %v470_v23, %v437_v30  ;;  %v582_v0 = vand.u32 4294901760, %v3611_v17  ;;  %v3647_v22 = vmul.f32 %v136_v16, %v130_v26 }
  0xc6   :  { %616 = vmatpush.msra.mxu2 %v3553_v20  ;;  %v3641_v4 = vpop.permute.xlu0 %219  ;;  %v161_v21 = vpop.permute.xlu1 %160  ;;  %v3643_v34 = vand.u32 4294901760, %v475_v47  ;;  %651 = vmatmul.f32.vlgmr.msra.gmra.mxu3 %v3550_v19  ;;  %v138_v33 = vperm.slane %v3433_v61, 3  ;;  %v137_v23 = vperm.slane %v3433_v61, 2  ;;  %v576_v17 = vand.u32 4294901760, %v575_v39 }
  0xc7   :  { %v3650_v37 = vpop.permute.xlu2 %336  ;;  %v169_v30 = vsel %vm166_vm2, %v3406_v51, %v161_v21  ;;  %680 = vmatpush.msrb.mxu0 %v568_v27  ;;  %v778_v28 = vand.u32 4294901760, %v3634_v44  ;;  %571 = vmatpush.msra.mxu1 %v570_v25  ;;  %v3661_v26 = vand.u32 4294901760, %v542_v36  ;;  %v128_v51 = vsel %vm127_vm3, %v3592_v53, %v3402_v49  ;;  %v401_v25 = vld.sshfl [vmem:[#allocation1 + $0x8] sm:$0xff pattern:$0x75316420] }
  0xc8   :  { %740 = vmatpush.msrb.mxu2 %v3617_v32  ;;  %v339_v16 = vsel %vm338_vm15, %v335_v41, %v3650_v37  ;;  %v183_v2 = vmul.f32 %v175_v60, %v169_v30  ;;  %v176_v61 = vperm.slane %v3427_v59, 2  ;;  %v129_v41 = vsel %vm127_vm3, %v3530_v6, %v3592_v53 }
  0xc9   :  { %v356_v27 = vmul.f32 %v348_v46, %v339_v16  ;;  %619 = vmatmul.f32.vlgmr.msra.gmra.mxu2 %v3524_v63  ;;  %684 = vmatpush.msrb.mxu0 %v574_v57  ;;  %v779_v49 = vsub.f32 %v3634_v44, %v778_v28  ;;  %v3678_v36 = vsub.f32 %v475_v47, %v3643_v34  ;;  %v177_v57 = vperm.slane %v3427_v59, 3 }
  0xca   :  { %742 = vmatpush.msrb.mxu2 %v3643_v34  ;;  %577 = vmatpush.msra.mxu1 %v576_v17  ;;  %v375_v39 = vrot.slane %v3647_v22, 2  ;;  %v387_v60 = vrot.slane %v183_v2, 7  ;;  %v5774_v6 = vand.u32 4294901760, %v3553_v20  ;;  %v97_v53 = vperm.slane %v3421_v58, 1 }
  0xcb   :  { %v506_v46 = vsel %vm444_vm7, %v356_v27, 0  ;;  %v53_v30 = vsel %vm50_vm4, %v3390_v38, %v3541_v15  ;;  %v780_v59 = vand.u32 4294901760, %v779_v49  ;;  %v784_v47 = vand.u32 4294901760, %v3678_v36 }
  0xcc   :  { %688 = vmatpush.msrb.mxu0 %v5774_v6  ;;  %v3690_v16 = vand.u32 4294901760, %v506_v46  ;;  %583 = vmatpush.msra.mxu1 %v582_v0  ;;  %v3694_v22 = vmul.f32 %v137_v23, %v129_v41  ;;  %v3696_v2 = vmul.f32 %v138_v33, %v128_v51  ;;  %v231_v20 = vperm.slane %v3451_v1, 2 }
  0xcd   :  { %v456_v17 = vsel %vm454_vm10, %v375_v39, %v387_v60  ;;  %544 = vmatmul.f32.gmra.mxu0 %v3661_v26  ;;  %585 = vmatmul.f32.vlgmr.msra.gmra.mxu1 %v3506_v35  ;;  %v232_v38 = vperm.slane %v3451_v1, 3  ;;  %v225_v0 = vsel %vm221_vm5, %v3641_v4, %v3414_v56  ;;  %v5775_v60 = vrot.slane %v3599_v11, 1 }
  0xce   :  { %823 = vmatpush.msra.mxu0 %v3634_v44  ;;  %v3708_v23 = vsub.f32 %v506_v46, %v3690_v16  ;;  %v460_v33 = vsel %vm195_vm0, %v456_v17, %v401_v25  ;;  %711 = vmatpush.msrb.mxu1 %v3567_v29  ;;  %v163_v51 = vpop.permute.xlu0 %162  ;;  %v3712_v27 = vpop.permute.xlu1 %82  ;;  %v785_v29 = vsub.f32 %v3678_v36, %v784_v47  ;;  %v98_v44 = vperm.slane %v3421_v58, 2 }
  0xcf   :  { %781 = vmatpush.msrb.mxu3 %v780_v59  ;;  %v167_v1 = vsel %vm166_vm2, %v163_v51, %v3410_v54  ;;  %v168_v56 = vsel %vm166_vm2, %v161_v21, %v163_v51  ;;  %v91_v41 = vsel %vm88_vm1, %v3400_v48, %v3712_v27  ;;  %v465_v54 = vsel %vm463_vm12, %v460_v33, %v5775_v60 }
  0xd0   :  { %826 = vmatpush.msra.mxu0 %v3678_v36  ;;  %v184_v25 = vmul.f32 %v176_v61, %v168_v56  ;;  %v185_v49 = vmul.f32 %v177_v57, %v167_v1  ;;  %v105_v46 = vmul.f32 %v97_v53, %v91_v41  ;;  %713 = vmatpush.msrb.mxu1 %v3534_v8  ;;  %v5776_v21 = vperm.slane %v3439_v62, 1 }
  0xd1   :  { %v376_v59 = vrot.slane %v3694_v22, 2  ;;  %624 = vmatmul.f32.gmra.mxu2 %v3561_v24  ;;  %v786_v48 = vand.u32 4294901760, %v785_v29  ;;  %v3735_v17 = vand.u32 4294901760, %v465_v54  ;;  %657 = vmatmul.f32.gmra.mxu3 %v3587_v43  ;;  %v377_v61 = vrot.slane %v3696_v2, 2 }
  0xd2   :  { %v66_v6 = vmul.f32 %v5776_v21, %v53_v30  ;;  %v222_v8 = vsel %vm221_vm5, %v3583_v42, %v3641_v4  ;;  %v389_v11 = vrot.slane %v185_v49, 7  ;;  %v363_v57 = vrot.slane %v105_v46, 5  ;;  %715 = vmatpush.msrb.mxu1 %v3547_v18  ;;  %v403_v30 = vld.sshfl [vmem:[#allocation1 + $0x18] sm:$0xff pattern:$0x75316420] }
  0xd3   :  { %v3744_v53 = vmul.f32 %v232_v38, %v225_v0  ;;  %v388_v33 = vrot.slane %v184_v25, 7  ;;  %787 = vmatpush.msrb.mxu3 %v786_v48  ;;  %744 = vmatpush.msrb.mxu2 %v3735_v17  ;;  %v789_v51 = vsub.f32 %v465_v54, %v3735_v17  ;;  %v994_v1 = vand.u32 4294901760, %v3708_v23  ;;  %v481_v46 = vld [vmem:[%s5669_s3 + $0x8] sm:$0x1] }
  0xd4   :  { %v349_v56 = vperm.slane %v3515_v40, 3  ;;  %v458_v42 = vsel %vm454_vm10, %v377_v61, %v389_v11  ;;  %v446_v4 = vsel %vm444_vm7, %v66_v6, %v363_v57  ;;  %717 = vmatpush.msrb.mxu1 %v3528_v3  ;;  %v270_v18 = vperm.slane %v3478_v13, 2  ;;  %489 = vperm.xlu2 %3263, %v481_v46  }
  0xd5   :  { %829 = vmatpush.msra.mxu0 %v789_v51  ;;  %v271_v38 = vperm.slane %v3478_v13, 3  ;;  %v451_v0 = vsel %vm449_vm11, %v446_v4, %v375_v39  ;;  %v790_v41 = vand.u32 4294901760, %v789_v51  ;;  %v3759_v29 = vmul.f32 %v231_v20, %v222_v8  ;;  %589 = vmatmul.f32.gmra.mxu1 %v3536_v10  ;;  %v402_v39 = vld.sshfl [vmem:[#allocation1 + $0x10] sm:$0xff pattern:$0x75316420] }
  0xd6   :  { %857 = vmatpush.msra.mxu1 %v3617_v32  ;;  %v342_v40 = vsel %vm338_vm15, %v3650_v37, %v3532_v7  ;;  %v462_v25 = vsel %vm195_vm0, %v458_v42, %v403_v30  ;;  %690 = vmatmul.f32.vlgmr.msrb.gmra.mxu0 %v3506_v35  ;;  %v259_v3 = vpop.permute.xlu1 %258  ;;  %v3768_v49 = vand.u32 4294901760, %v451_v0  ;;  %v415_v13 = vrot.slane %v3744_v53, 1 }
  0xd7   :  { %v457_v20 = vsel %vm454_vm10, %v376_v59, %v388_v33  ;;  %v261_v7 = vsel %vm260_vm8, %v3468_v9, %v259_v3  ;;  %v995_v37 = vsub.f32 %v3708_v23, %v994_v1  ;;  %v264_v60 = vsel %vm260_vm8, %v259_v3, %v3460_v5 }
  0xd8   :  { %859 = vmatpush.msra.mxu1 %v3643_v34  ;;  %746 = vmatpush.msrb.mxu2 %v3768_v49  ;;  %v791_v54 = vsub.f32 %v789_v51, %v790_v41  ;;  %v795_v9 = vsub.f32 %v451_v0, %v3768_v49  ;;  %v3794_v21 = vsel %vm463_vm12, %v462_v25, %v415_v13  ;;  %v414_v6 = vrot.slane %v3759_v29, 1 }
  0xd9   :  { %752 = vmatmul.f32.vlgmr.msrb.gmra.mxu2 %v3602_v12  ;;  %v357_v48 = vmul.f32 %v349_v56, %v342_v40  ;;  %v461_v8 = vsel %vm195_vm0, %v457_v20, %v402_v39  ;;  %v278_v5 = vmul.f32 %v270_v18, %v261_v7  ;;  %v279_v11 = vmul.f32 %v271_v38, %v264_v60 }
  0xda   :  { %861 = vmatpush.msra.mxu1 %v3735_v17  ;;  %892 = vmatpush.msra.mxu2 %v778_v28  ;;  %v792_v57 = vand.u32 4294901760, %v791_v54  ;;  %v796_v30 = vand.u32 4294901760, %v795_v9  ;;  %v996_v33 = vand.u32 4294901760, %v995_v37  ;;  %v309_v51 = vperm.slane %v3483_v14, 2  ;;  %v85_v28 = vpop.permute.xlu0 %84 }
  0xdb   :  { %832 = vmatpush.msra.mxu0 %v795_v9  ;;  %v310_v56 = vperm.slane %v3483_v14, 3  ;;  %v466_v4 = vsel %vm463_vm12, %v461_v8, %v414_v6  ;;  %v509_v18 = vsel %vm444_vm7, %v357_v48, 0  ;;  %v99_v38 = vperm.slane %v3421_v58, 3 }
  0xdc   :  { %863 = vmatpush.msra.mxu1 %v3768_v49  ;;  %896 = vmatpush.msra.mxu2 %v784_v47  ;;  %v797_v42 = vsub.f32 %v795_v9, %v796_v30  ;;  %v90_v36 = vsel %vm88_vm1, %v3712_v27, %v85_v28  ;;  %v426_v47 = vrot.slane %v278_v5, 6  ;;  %v427_v0 = vrot.slane %v279_v11, 6 }
  0xdd   :  { %956 = vmatpush.msrb.mxu0 %v3690_v16  ;;  %793 = vmatpush.msrb.mxu3 %v792_v57  ;;  %v89_v27 = vsel %vm88_vm1, %v85_v28, %v3404_v50  ;;  %v3824_v39 = vand.u32 4294901760, %v466_v4  ;;  %v106_v20 = vmul.f32 %v98_v44, %v90_v36  ;;  %v59_v46 = vperm.slane %v3439_v62, 2 }
  0xde   :  { %694 = vmatmul.f32.gmra.mxu0 %v3536_v10  ;;  %719 = vmatmul.f32.vlgmr.msrb.gmra.mxu1 %v3506_v35  ;;  %v298_v14 = vpop.permute.xlu1 %297  ;;  %v798_v40 = vand.u32 4294901760, %v797_v42  ;;  %v471_v37 = vsel %vm468_vm13, %v414_v6, %v426_v47  ;;  %v472_v50 = vsel %vm468_vm13, %v415_v13, %v427_v0  ;;  %v60_v9 = vperm.slane %v3439_v62, 3 }
  0xdf   :  { %900 = vmatpush.msra.mxu2 %v790_v41  ;;  %v300_v29 = vsel %vm299_vm9, %v3504_v31, %v298_v14  ;;  %v303_v58 = vsel %vm299_vm9, %v298_v14, %v3408_v52  ;;  %997 = vmatpush.msrb.mxu1 %v996_v33  ;;  %v3826_v41 = vand.u32 4294901760, %v509_v18  ;;  %v107_v52 = vmul.f32 %v99_v38, %v89_v27 }
  0xe0   :  { %v317_v25 = vmul.f32 %v309_v51, %v300_v29  ;;  %v318_v3 = vmul.f32 %v310_v56, %v303_v58  ;;  %799 = vmatpush.msrb.mxu3 %v798_v40  ;;  %v3841_v48 = vsub.f32 %v466_v4, %v3824_v39  ;;  %v3854_v62 = vand.u32 4294901760, %v3794_v21 }
  0xe1   :  { %904 = vmatpush.msra.mxu2 %v796_v30  ;;  %801 = vmatmul.f32.vlgmr.msrb.gmra.mxu3 %v3506_v35  ;;  %v3849_v6 = vsub.f32 %v509_v18, %v3826_v41  ;;  %v365_v5 = vrot.slane %v107_v52, 5 }
  0xe2   :  { %v438_v31 = vrot.slane %v317_v25, 3  ;;  %v439_v7 = vrot.slane %v318_v3, 3  ;;  %760 = vmatmul.f32.gmra.mxu2 %v3661_v26  ;;  %927 = vmatpush.msra.mxu3 %v3617_v32  ;;  %v364_v32 = vrot.slane %v106_v20, 5  ;;  %v1006_v51 = vand.u32 4294901760, %v3841_v48 }
  0xe3   :  { %1039 = vmatpush.msrb.mxu2 %v3708_v23  ;;  %v1210_v44 = vand.u32 4294901760, %v3849_v6  ;;  %v3877_v28 = vsub.f32 %v3794_v21, %v3854_v62 }
  0xe4   :  { %v476_v60 = vsel %vm473_vm14, %v471_v37, %v438_v31  ;;  %v477_v54 = vsel %vm473_vm14, %v472_v50, %v439_v7  ;;  %929 = vmatpush.msra.mxu3 %v3643_v34  ;;  %v1007_v21 = vsub.f32 %v3841_v48, %v1006_v51 }
  0xe5   :  { %v3844_v53 = vand.u32 4294901760, %v476_v60  ;;  %v3846_v13 = vand.u32 4294901760, %v477_v54  ;;  %v1211_v2 = vsub.f32 %v3849_v6, %v1210_v44 }
  0xe6   :  { %723 = vmatmul.f32.gmra.mxu1 %v3536_v10  ;;  %835 = vmatmul.f32.vlgmr.msra.gmra.mxu0 %v3524_v63  ;;  %v45_v8 = vpop.permute.xlu1 %44  ;;  %v1008_v14 = vand.u32 4294901760, %v1007_v21 }
  0xe7   :  { %931 = vmatpush.msra.mxu3 %v3735_v17  ;;  %v51_v34 = vsel %vm50_vm4, %v45_v8, %v3395_v45  ;;  %v52_v11 = vsel %vm50_vm4, %v3541_v15, %v45_v8  ;;  %958 = vmatpush.msrb.mxu0 %v3844_v53  ;;  %v999_v57 = vsub.f32 %v476_v60, %v3844_v53  ;;  %v1212_v40 = vand.u32 4294901760, %v1211_v2 }
  0xe8   :  { %v67_v30 = vmul.f32 %v59_v46, %v52_v11  ;;  %v68_v33 = vmul.f32 %v60_v9, %v51_v34  ;;  %v3867_v56 = vsub.f32 %v477_v54, %v3846_v13 }
  0xe9   :  { %933 = vmatpush.msra.mxu3 %v3768_v49  ;;  %960 = vmatpush.msrb.mxu0 %v3824_v39  ;;  %v1000_v45 = vand.u32 4294901760, %v999_v57 }
  0xea   :  { %v447_v17 = vsel %vm444_vm7, %v67_v30, %v364_v32  ;;  %v448_v15 = vsel %vm444_vm7, %v68_v33, %v365_v5  ;;  %1042 = vmatpush.msrb.mxu2 %v999_v57  ;;  %805 = vmatmul.f32.gmra.mxu3 %v3536_v10  ;;  %v1216_v38 = vand.u32 4294901760, %v3867_v56  ;;  %v3958_v32 = vld [vmem:[%s5667_s1 + $0x4] ss:$8 sm:$0xf] }
  0xeb   :  { %1073 = vmatpush.msrb.mxu3 %v3690_v16  ;;  %906 = vmatmul.f32.vlgmr.msra.gmra.mxu2 %v3506_v35  ;;  %v452_v49 = vsel %vm449_vm11, %v447_v17, %v376_v59  ;;  %v1001_v42 = vsub.f32 %v999_v57, %v1000_v45  ;;  %v453_v4 = vsel %vm449_vm11, %v448_v15, %v377_v61  ;;  %v1222_v61 = vand.u32 4294901760, %v3877_v28 }
  0xec   :  { %1045 = vmatpush.msrb.mxu2 %v3841_v48  ;;  %v961_v18 = vand.u32 4294901760, %v452_v49  ;;  %v3891_v36 = vand.u32 4294901760, %v453_v4  ;;  %v1217_v0 = vsub.f32 %v3867_v56, %v1216_v38 }
  0xed   :  { %1075 = vmatpush.msrb.mxu3 %v3844_v53  ;;  %v1002_v47 = vand.u32 4294901760, %v1001_v42  ;;  %v1223_v25 = vsub.f32 %v3877_v28, %v1222_v61 }
  0xee   :  { %840 = vmatmul.f32.gmra.mxu0 %v3561_v24  ;;  %867 = vmatmul.f32.vlgmr.msra.gmra.mxu1 %v3550_v19  ;;  %v1011_v22 = vsub.f32 %v452_v49, %v961_v18  ;;  %v1227_v59 = vsub.f32 %v453_v4, %v3891_v36  ;;  %v1218_v23 = vand.u32 4294901760, %v1217_v0 }
  0xef   :  { %1077 = vmatpush.msrb.mxu3 %v3824_v39  ;;  %962 = vmatpush.msrb.mxu0 %v961_v18  ;;  %v1224_v20 = vand.u32 4294901760, %v1223_v25 }
  0xf0   :  { %1003 = vmatpush.msrb.mxu1 %v1002_v47  ;;  %v1012_v29 = vand.u32 4294901760, %v1011_v22  ;;  %v1228_v58 = vand.u32 4294901760, %v1227_v59  ;;  %1048 = vmatpush.msrb.mxu2 %v1011_v22 }
  0xf1   :  { %1108 = vmatpush.msra.mxu0 %v994_v1  ;;  %1079 = vmatpush.msrb.mxu3 %v961_v18 }
  0xf2   :  { %1009 = vmatpush.msrb.mxu1 %v1008_v14  ;;  %v1013_v27 = vsub.f32 %v1011_v22, %v1012_v29  ;;  %935 = vmatmul.f32.vlgmr.msra.gmra.mxu3 %v3506_v35  ;;  %v1229_v3 = vsub.f32 %v1227_v59, %v1228_v58 }
  0xf3   :  { %1112 = vmatpush.msra.mxu0 %v1000_v45  ;;  %910 = vmatmul.f32.gmra.mxu2 %v3536_v10 }
  0xf4   :  { %1172 = vmatpush.msra.mxu2 %v3826_v41  ;;  %1213 = vmatpush.msra.mxu3 %v1212_v40  ;;  %v1014_v1 = vand.u32 4294901760, %v1013_v27  ;;  %v1230_v31 = vand.u32 4294901760, %v1229_v3 }
  0xf5   :  { %1116 = vmatpush.msra.mxu0 %v1006_v51 }
  0xf6   :  { %1174 = vmatpush.msra.mxu2 %v3846_v13  ;;  %1219 = vmatpush.msra.mxu3 %v1218_v23 }
  0xf7   :  { %873 = vmatmul.f32.gmra.mxu1 %v3587_v43  ;;  %968 = vmatmul.f32.vlgmr.msrb.gmra.mxu0 %v3602_v12 }
  0xf8   :  { %1120 = vmatpush.msra.mxu0 %v1012_v29  ;;  %1176 = vmatpush.msra.mxu2 %v3854_v62 }
  0xf9   :  { %1225 = vmatpush.msra.mxu3 %v1224_v20  ;;  %1015 = vmatpush.msrb.mxu1 %v1014_v1 }
  0xfa   :  { %1255 = vmatpush.msrb.mxu0 %v3849_v6  ;;  %1178 = vmatpush.msra.mxu2 %v3891_v36 }
  0xfb   :  { %1143 = vmatpush.msra.mxu1 %v3690_v16  ;;  %1231 = vmatpush.msra.mxu3 %v1230_v31 }
  0xfc   :  { %1258 = vmatpush.msrb.mxu0 %v3867_v56  ;;  %939 = vmatmul.f32.gmra.mxu3 %v3536_v10 }
  0xfd   :  { %1051 = vmatmul.f32.vlgmr.msrb.gmra.mxu2 %v3524_v63  ;;  %1145 = vmatpush.msra.mxu1 %v3844_v53 }
  0xfe   :  { %1324 = vmatpush.msrb.mxu2 %v1210_v44  ;;  %1261 = vmatpush.msrb.mxu0 %v3877_v28 }
  0xff   :  { %1147 = vmatpush.msra.mxu1 %v3824_v39  ;;  %976 = vmatmul.f32.gmra.mxu0 %v3661_v26 }
 0x100   :  { %1328 = vmatpush.msrb.mxu2 %v1216_v38  ;;  %1017 = vmatmul.f32.vlgmr.msrb.gmra.mxu1 %v3506_v35 }
 0x101   :  { %1264 = vmatpush.msrb.mxu0 %v1227_v59  ;;  %1149 = vmatpush.msra.mxu1 %v961_v18 }
 0x102   :  { %1332 = vmatpush.msrb.mxu2 %v1222_v61 }
 0x103   :  { %1289 = vmatpush.msrb.mxu1 %v3826_v41 }
 0x104   :  { %1336 = vmatpush.msrb.mxu2 %v1228_v58  ;;  %1083 = vmatmul.f32.vlgmr.msrb.gmra.mxu3 %v3550_v19 }
 0x105   :  { %1291 = vmatpush.msrb.mxu1 %v3846_v13  ;;  %1056 = vmatmul.f32.gmra.mxu2 %v3561_v24 }
 0x106   :  { %1359 = vmatpush.msrb.mxu3 %v3826_v41 }
 0x107   :  { %1293 = vmatpush.msrb.mxu1 %v3854_v62  ;;  %1122 = vmatmul.f32.vlgmr.msra.gmra.mxu0 %v3506_v35 }
 0x108   :  { %1361 = vmatpush.msrb.mxu3 %v3846_v13  ;;  %1021 = vmatmul.f32.gmra.mxu1 %v3536_v10 }
 0x109   :  { %1295 = vmatpush.msrb.mxu1 %v3891_v36 }
 0x10a   :  { %1363 = vmatpush.msrb.mxu3 %v3854_v62  ;;  %v1553_v62 = vperm.slane %v3958_v32, 0 }
 0x10c   :  { %1365 = vmatpush.msrb.mxu3 %v3891_v36 }
 0x10d   :  { %1089 = vmatmul.f32.gmra.mxu3 %v3587_v43  ;;  %1184 = vmatmul.f32.vlgmr.msra.gmra.mxu2 %v3602_v12 }
 0x10f   :  { %1126 = vmatmul.f32.gmra.mxu0 %v3536_v10 }
 0x110   :  { %1151 = vmatmul.f32.vlgmr.msra.gmra.mxu1 %v3506_v35 }
 0x115   :  { %1192 = vmatmul.f32.gmra.mxu2 %v3661_v26  ;;  %1233 = vmatmul.f32.vlgmr.msra.gmra.mxu3 %v3506_v35 }
 0x117   :  { %1267 = vmatmul.f32.vlgmr.msrb.gmra.mxu0 %v3524_v63 }
 0x118   :  { %1155 = vmatmul.f32.gmra.mxu1 %v3536_v10 }
 0x11c   :  { %v3949_v63 = vpop.permute.xlu0 %484 }
 0x11d   :  { %1237 = vmatmul.f32.gmra.mxu3 %v3536_v10  ;;  %1338 = vmatmul.f32.vlgmr.msrb.gmra.mxu2 %v3506_v35 }
 0x11f   :  { %1272 = vmatmul.f32.gmra.mxu0 %v3561_v24 }
 0x120   :  { %1299 = vmatmul.f32.vlgmr.msrb.gmra.mxu1 %v3550_v19 }
 0x125   :  { %1342 = vmatmul.f32.gmra.mxu2 %v3536_v10  ;;  %1367 = vmatmul.f32.vlgmr.msrb.gmra.mxu3 %v3506_v35 }
 0x128   :  { %1305 = vmatmul.f32.gmra.mxu1 %v3587_v43 }
 0x12d   :  { %1371 = vmatmul.f32.gmra.mxu3 %v3536_v10 }
 0x12e   :  { %v3952_v24 = vpop.permute.xlu2 %489 }
 0x141   :  { %v537_v12 = vpop.f32.mrf.mxu0 }
 0x142   :  { %v538_v39 = vadd.f32 %v537_v12, %v3949_v63 }
 0x149   :  { %v652_v19 = vpop.f32.mrf.mxu3 }
 0x14a   :  { %v545_v26 = vpop.f32.mrf.mxu0  ;;  %v586_v16 = vpop.f32.mrf.mxu1 }
 0x14b   :  { %v587_v7 = vadd.f32 %v586_v16, %v538_v39  ;;  %v546_v35 = vadd.f32 %v545_v26, %v3952_v24 }
 0x14c   :  { %v620_v41 = vpop.f32.mrf.mxu2 }
 0x14d   :  { %v621_v50 = vadd.f32 %v620_v41, %v587_v7 }
 0x14f   :  { %v653_v46 = vadd.f32 %v652_v19, %v621_v50 }
 0x152   :  { %v590_v52 = vpop.f32.mrf.mxu1 }
 0x153   :  { %v691_v37 = vpop.f32.mrf.mxu0  ;;  %v591_v10 = vadd.f32 %v590_v52, %v546_v35 }
 0x154   :  { %v625_v43 = vpop.f32.mrf.mxu2  ;;  %v692_v60 = vadd.f32 %v691_v37, %v653_v46  ;;  %v658_v6 = vpop.f32.mrf.mxu3 }
 0x155   :  { %v626_v48 = vadd.f32 %v625_v43, %v591_v10 }
 0x157   :  { %v659_v8 = vadd.f32 %v658_v6, %v626_v48 }
 0x15b   :  { %v695_v54 = vpop.f32.mrf.mxu0  ;;  %v720_v9 = vpop.f32.mrf.mxu1 }
 0x15c   :  { %v721_v53 = vadd.f32 %v720_v9, %v692_v60  ;;  %v753_v13 = vpop.f32.mrf.mxu2  ;;  %v696_v5 = vadd.f32 %v695_v54, %v659_v8 }
 0x15d   :  { %v754_v45 = vadd.f32 %v753_v13, %v3949_v63 }
 0x15e   :  { %1375 = vst [vmem:[%s5670_s6] sm:$0xff] %v721_v53  ;;  %1695 = vrot.lane.b32.xlu0 %v721_v53, %s3278_s11  ;;  %1611 = vrot.lane.b32.xlu2 %v721_v53, %s3276_s9  ;;  %v3967_v30 = vmul.f32 %v1553_v62, %v721_v53 }
 0x15f   :  { %1653 = vrot.lane.b32.xlu1 %v721_v53, %s3277_s10 }
 0x160   :  { %v5678_v15 = vrot.slane %v3967_v30, 4 }
 0x163   :  { %v724_v34 = vpop.f32.mrf.mxu1  ;;  %v836_v11 = vpop.f32.mrf.mxu0 }
 0x164   :  { %v725_v57 = vadd.f32 %v724_v34, %v696_v5  ;;  %v802_v33 = vpop.f32.mrf.mxu3 }
 0x165   :  { %v761_v51 = vpop.f32.mrf.mxu2  ;;  %v803_v44 = vadd.f32 %v802_v33, %v754_v45 }
 0x166   :  { %1379 = vst [vmem:[%s5670_s6 + $0x20] sm:$0x1] %v725_v57  ;;  %1509 = vrot.lane.b32.xlu0 %v721_v53, %s3274_s30  ;;  %1569 = vrot.lane.b32.xlu2 %v721_v53, %s3275_s8  ;;  %v1565_v56 = vmul.f32 %v1553_v62, %v725_v57  ;;  %v762_v38 = vadd.f32 %v761_v51, %v3952_v24 }
 0x167   :  { %1467 = vrot.lane.b32.xlu1 %v721_v53, %s3273_s29  ;;  %v837_v4 = vadd.f32 %v836_v11, %v803_v44 }
 0x168   :  { %v1833_v17 = vrot.slane %v1565_v56, 4 }
 0x16a   :  { %v3980_v28 = vsel %vm195_vm0, %v5678_v15, %v1833_v17 }
 0x16b   :  { %v841_v49 = vpop.f32.mrf.mxu0  ;;  %v868_v42 = vpop.f32.mrf.mxu1 }
 0x16c   :  { %v869_v36 = vadd.f32 %v868_v42, %v837_v4 }
 0x16d   :  { %v806_v18 = vpop.f32.mrf.mxu3 }
 0x16e   :  { %v907_v21 = vpop.f32.mrf.mxu2  ;;  %1613 = vrot.lane.b32.xlu0 %v725_v57, %s3276_s9  ;;  %1425 = vrot.lane.b32.xlu2 %v721_v53, %s3272_s0  ;;  %v807_v47 = vadd.f32 %v806_v18, %v762_v38 }
 0x16f   :  { %1383 = vrot.lane.b32.xlu1 %v721_v53, %s3271_s28  ;;  %v908_v59 = vadd.f32 %v907_v21, %v869_v36 }
 0x170   :  { %v842_v61 = vadd.f32 %v841_v49, %v807_v47 }
 0x174   :  { %v874_v22 = vpop.f32.mrf.mxu1  ;;  %v969_v2 = vpop.f32.mrf.mxu0 }
 0x175   :  { %v936_v0 = vpop.f32.mrf.mxu3  ;;  %v875_v58 = vadd.f32 %v874_v22, %v842_v61  ;;  %v970_v20 = vadd.f32 %v969_v2, %v3949_v63 }
 0x176   :  { %v911_v14 = vpop.f32.mrf.mxu2  ;;  %1571 = vrot.lane.b32.xlu0 %v725_v57, %s3275_s8  ;;  %1655 = vrot.lane.b32.xlu2 %v725_v57, %s3277_s10  ;;  %v3988_v29 = vadd.f32 %v936_v0, %v908_v59 }
 0x177   :  { %1697 = vrot.lane.b32.xlu1 %v725_v57, %s3278_s11  ;;  %v912_v25 = vadd.f32 %v911_v14, %v875_v58 }
 0x178   :  { %1376 = vst [vmem:[%s5670_s6 + $0x8] sm:$0xff] %v3988_v29 }
 0x17c   :  { %v977_v40 = vpop.f32.mrf.mxu0 }
 0x17d   :  { %v1018_v27 = vpop.f32.mrf.mxu1  ;;  %v978_v7 = vadd.f32 %v977_v40, %v3952_v24 }
 0x17e   :  { %1427 = vrot.lane.b32.xlu0 %v725_v57, %s3272_s0  ;;  %1469 = vrot.lane.b32.xlu2 %v725_v57, %s3273_s29  ;;  %v1019_v31 = vadd.f32 %v1018_v27, %v970_v20 }
 0x17f   :  { %v940_v3 = vpop.f32.mrf.mxu3  ;;  %1511 = vrot.lane.b32.xlu1 %v725_v57, %s3274_s30 }
 0x180   :  { %v3998_v23 = vadd.f32 %v940_v3, %v912_v25  ;;  %v1052_v1 = vpop.f32.mrf.mxu2 }
 0x181   :  { %v1053_v16 = vadd.f32 %v1052_v1, %v1019_v31  ;;  %v4121_v1 = vld [vmem:[%s5667_s1 + $0x20] ss:$8 sm:$0xf] }
 0x182   :  { %1380 = vst [vmem:[%s5670_s6 + $0x28] sm:$0x1] %v3998_v23  ;;  %v1721_v20 = vperm.slane %v4121_v1, 0 }
 0x183   :  { %5786 = vst [vmem:[#allocation11_spill] sm:$0xff] %v4121_v1 }
 0x184   :  { %v1123_v26 = vpop.f32.mrf.mxu0 }
 0x185   :  { %v1022_v12 = vpop.f32.mrf.mxu1 }
 0x186   :  { %1385 = vrot.lane.b32.xlu0 %v725_v57, %s3271_s28  ;;  %1471 = vrot.lane.b32.xlu2 %v3988_v29, %s3273_s29  ;;  %v1023_v52 = vadd.f32 %v1022_v12, %v978_v7 }
 0x187   :  { %1615 = vrot.lane.b32.xlu1 %v3988_v29, %s3276_s9  ;;  %v1084_v41 = vpop.f32.mrf.mxu3 }
 0x188   :  { %v1057_v39 = vpop.f32.mrf.mxu2  ;;  %v1085_v19 = vadd.f32 %v1084_v41, %v1053_v16 }
 0x189   :  { %v1058_v43 = vadd.f32 %v1057_v39, %v1023_v52 }
 0x18a   :  { %v1124_v37 = vadd.f32 %v1123_v26, %v1085_v19 }
 0x18c   :  { %v1127_v46 = vpop.f32.mrf.mxu0 }
 0x18d   :  { %v1152_v50 = vpop.f32.mrf.mxu1 }
 0x18e   :  { %v4011_v35 = vadd.f32 %v1152_v50, %v1124_v37  ;;  %1657 = vrot.lane.b32.xlu0 %v3988_v29, %s3277_s10  ;;  %1701 = vrot.lane.b32.xlu2 %v3998_v23, %s3278_s11 }
 0x18f   :  { %1699 = vrot.lane.b32.xlu1 %v3988_v29, %s3278_s11 }
 0x190   :  { %1377 = vst [vmem:[%s5670_s6 + $0x10] sm:$0xff] %v4011_v35  ;;  %v1090_v10 = vpop.f32.mrf.mxu3  ;;  %v1185_v60 = vpop.f32.mrf.mxu2 }
 0x191   :  { %v1091_v54 = vadd.f32 %v1090_v10, %v1058_v43  ;;  %v1186_v8 = vadd.f32 %v1185_v60, %v3949_v63 }
 0x193   :  { %v1128_v9 = vadd.f32 %v1127_v46, %v1091_v54 }
 0x194   :  { %v1268_v62 = vpop.f32.mrf.mxu0 }
 0x195   :  { %v1156_v48 = vpop.f32.mrf.mxu1 }
 0x196   :  { %v4023_v53 = vadd.f32 %v1156_v48, %v1128_v9  ;;  %1513 = vrot.lane.b32.xlu0 %v3988_v29, %s3274_s30  ;;  %1617 = vrot.lane.b32.xlu2 %v3998_v23, %s3276_s9  ;;  %v1963_v48 = vld [vmem:[%s5671_s5] sm:$0xff] }
 0x197   :  { %1573 = vrot.lane.b32.xlu1 %v3988_v29, %s3275_s8 }
 0x198   :  { %5777 = vst [vmem:[#allocation2_spill] sm:$0xff] %v4023_v53  ;;  %v1193_v13 = vpop.f32.mrf.mxu2  ;;  %v1234_v6 = vpop.f32.mrf.mxu3 }
 0x199   :  { %1381 = vst [vmem:[%s5670_s6 + $0x30] sm:$0x1] %v4023_v53  ;;  %v1235_v5 = vadd.f32 %v1234_v6, %v1186_v8  ;;  %v1194_v33 = vadd.f32 %v1193_v13, %v3952_v24  ;;  %v4189_v8 = vld [vmem:[%s5667_s1 + $0x7] ss:$8 sm:$0xf] }
 0x19b   :  { %v1269_v11 = vadd.f32 %v1268_v62, %v1235_v5  ;;  %v4196_v5 = vld [vmem:[%s5667_s1 + $0x6] ss:$8 sm:$0xf] }
 0x19c   :  { %v1273_v63 = vpop.f32.mrf.mxu0 }
 0x19d   :  { %v1300_v34 = vpop.f32.mrf.mxu1 }
 0x19e   :  { %1619 = vrot.lane.b32.xlu0 %v4011_v35, %s3276_s9  ;;  %1575 = vrot.lane.b32.xlu2 %v3998_v23, %s3275_s8  ;;  %v1301_v56 = vadd.f32 %v1300_v34, %v1269_v11  ;;  %v4201_v34 = vld [vmem:[%s5667_s1 + $0x5] ss:$8 sm:$0xf] }
 0x19f   :  { %1659 = vrot.lane.b32.xlu1 %v3998_v23, %s3277_s10 }
 0x1a0   :  { %v1238_v57 = vpop.f32.mrf.mxu3  ;;  %v1339_v51 = vpop.f32.mrf.mxu2 }
 0x1a1   :  { %v1239_v45 = vadd.f32 %v1238_v57, %v1194_v33  ;;  %v1340_v17 = vadd.f32 %v1339_v51, %v1301_v56  ;;  %v1679_v51 = vperm.slane %v4189_v8, 0  ;;  %v1637_v56 = vperm.slane %v4196_v5, 0 }
 0x1a3   :  { %v1274_v44 = vadd.f32 %v1273_v63, %v1239_v45  ;;  %v1595_v45 = vperm.slane %v4201_v34, 0 }
 0x1a5   :  { %v1306_v49 = vpop.f32.mrf.mxu1 }
 0x1a6   :  { %1705 = vrot.lane.b32.xlu0 %v4023_v53, %s3278_s11  ;;  %1703 = vrot.lane.b32.xlu2 %v4011_v35, %s3278_s11  ;;  %v1307_v18 = vadd.f32 %v1306_v49, %v1274_v44 }
 0x1a7   :  { %1515 = vrot.lane.b32.xlu1 %v3998_v23, %s3274_s30 }
 0x1a8   :  { %v1368_v42 = vpop.f32.mrf.mxu3  ;;  %v1343_v24 = vpop.f32.mrf.mxu2 }
 0x1a9   :  { %v1369_v4 = vadd.f32 %v1368_v42, %v1340_v17  ;;  %v1344_v21 = vadd.f32 %v1343_v24, %v1307_v18 }
 0x1ab   :  { %1378 = vst [vmem:[%s5670_s6 + $0x18] sm:$0xff] %v1369_v4 }
 0x1ae   :  { %1579 = vrot.lane.b32.xlu0 %v4023_v53, %s3275_s8  ;;  %1577 = vrot.lane.b32.xlu2 %v4011_v35, %s3275_s8 }
 0x1af   :  { %1661 = vrot.lane.b32.xlu1 %v4011_v35, %s3277_s10 }
 0x1b0   :  { %v1372_v38 = vpop.f32.mrf.mxu3 }
 0x1b1   :  { %v4058_v36 = vadd.f32 %v1372_v38, %v1344_v21 }
 0x1b3   :  { %5778 = vst [vmem:[#allocation3_spill] sm:$0xff] %v4058_v36 }
 0x1b4   :  { %1382 = vst [vmem:[%s5670_s6 + $0x38] sm:$0x1] %v4058_v36 }
 0x1b6   :  { %1479 = vrot.lane.b32.xlu0 %v1369_v4, %s3273_s29  ;;  %1663 = vrot.lane.b32.xlu2 %v4023_v53, %s3277_s10 }
 0x1b7   :  { %1621 = vrot.lane.b32.xlu1 %v4023_v53, %s3276_s9 }
 0x1b8   :  { %v4069_v47 = vpop.permute.xlu2 %1611 }
 0x1b9   :  { %5779 = vst [vmem:[#allocation4_spill] sm:$0xff] %v4069_v47 }
 0x1be   :  { %1523 = vrot.lane.b32.xlu0 %v4058_v36, %s3274_s30  ;;  %1521 = vrot.lane.b32.xlu2 %v1369_v4, %s3274_s30 }
 0x1bf   :  { %1437 = vrot.lane.b32.xlu1 %v1369_v4, %s3272_s0 }
 0x1c0   :  { %v4075_v22 = vpop.permute.xlu2 %1569 }
 0x1c1   :  { %5780 = vst [vmem:[#allocation5_spill] sm:$0xff] %v4075_v22 }
 0x1c6   :  { %1473 = vrot.lane.b32.xlu0 %v3998_v23, %s3273_s29  ;;  %1395 = vrot.lane.b32.xlu2 %v1369_v4, %s3271_s28 }
 0x1c7   :  { %1429 = vrot.lane.b32.xlu1 %v3988_v29, %s3272_s0 }
 0x1c8   :  { %v4082_v2 = vpop.permute.xlu2 %1425 }
 0x1ce   :  { %1389 = vrot.lane.b32.xlu0 %v3998_v23, %s3271_s28  ;;  %1439 = vrot.lane.b32.xlu2 %v4058_v36, %s3272_s0 }
 0x1cf   :  { %1481 = vrot.lane.b32.xlu1 %v4058_v36, %s3273_s29 }
 0x1d0   :  { %v4090_v59 = vpop.permute.xlu0 %1695  ;;  %v4092_v61 = vpop.permute.xlu2 %1655 }
 0x1d1   :  { %5781 = vst [vmem:[#allocation6_spill] sm:$0xff] %v4090_v59  ;;  %v4094_v14 = vpop.permute.xlu1 %1653 }
 0x1d2   :  { %5782 = vst [vmem:[#allocation7_spill] sm:$0xff] %v4092_v61 }
 0x1d3   :  { %5783 = vst [vmem:[#allocation8_spill] sm:$0xff] %v4094_v14 }
 0x1d6   :  { %1665 = vrot.lane.b32.xlu0 %v1369_v4, %s3277_s10  ;;  %1431 = vrot.lane.b32.xlu2 %v3998_v23, %s3272_s0 }
 0x1d7   :  { %1397 = vrot.lane.b32.xlu1 %v4058_v36, %s3271_s28 }
 0x1d8   :  { %v4101_v0 = vpop.permute.xlu0 %1509  ;;  %v4103_v58 = vpop.permute.xlu2 %1469 }
 0x1d9   :  { %v4105_v40 = vpop.permute.xlu1 %1467 }
 0x1de   :  { %1475 = vrot.lane.b32.xlu0 %v4011_v35, %s3273_s29  ;;  %1623 = vrot.lane.b32.xlu2 %v1369_v4, %s3276_s9 }
 0x1df   :  { %1387 = vrot.lane.b32.xlu1 %v3988_v29, %s3271_s28 }
 0x1e0   :  { %v4112_v27 = vpop.permute.xlu0 %1613  ;;  %v4114_v25 = vpop.permute.xlu2 %1471 }
 0x1e1   :  { %5784 = vst [vmem:[#allocation9_spill] sm:$0xff] %v4112_v27  ;;  %v4116_v3 = vpop.permute.xlu1 %1383 }
 0x1e2   :  { %5785 = vst [vmem:[#allocation10_spill] sm:$0xff] %v4114_v25 }
 0x1e6   :  { %1625 = vrot.lane.b32.xlu0 %v4058_v36, %s3276_s9  ;;  %1581 = vrot.lane.b32.xlu2 %v1369_v4, %s3275_s8 }
 0x1e7   :  { %1707 = vrot.lane.b32.xlu1 %v1369_v4, %s3278_s11 }
 0x1e8   :  { %v4128_v31 = vpop.permute.xlu0 %1571  ;;  %v4130_v12 = vpop.permute.xlu2 %1701 }
 0x1e9   :  { %5787 = vst [vmem:[#allocation12_spill] sm:$0xff] %v4128_v31  ;;  %v4132_v26 = vpop.permute.xlu1 %1697 }
 0x1ea   :  { %5788 = vst [vmem:[#allocation13_spill] sm:$0xff] %v4132_v26  ;;  %v1716_v16 = vsel %vm338_vm15, %v4132_v26, %v4130_v12 }
 0x1eb   :  { %v1733_v39 = vmul.f32 %v1721_v20, %v1716_v16 }
 0x1ed   :  { %v1983_v41 = vsel %vm454_vm10, %v1733_v39, 0 }
 0x1ee   :  { %v4139_v7 = vand.u32 4294901760, %v1983_v41  ;;  %1583 = vrot.lane.b32.xlu0 %v4058_v36, %s3275_s8  ;;  %1709 = vrot.lane.b32.xlu2 %v4058_v36, %s3278_s11 }
 0x1ef   :  { %1517 = vrot.lane.b32.xlu1 %v4011_v35, %s3274_s30 }
 0x1f0   :  { %v4148_v19 = vsub.f32 %v1983_v41, %v4139_v7  ;;  %2000 = vmatpush.msra.mxu0 %v4139_v7  ;;  %2173 = vmatpush.msra.mxu3 %v4139_v7  ;;  %v4152_v52 = vpop.permute.xlu0 %1427  ;;  %v4154_v37 = vpop.permute.xlu2 %1617 }
 0x1f1   :  { %v4156_v50 = vpop.permute.xlu1 %1511  ;;  %v1632_v44 = vsel %vm260_vm8, %v4112_v27, %v4154_v37 }
 0x1f2   :  { %2125 = vmatpush.msra.mxu2 %v4148_v19  ;;  %v5676_v43 = vand.u32 4294901760, %v4148_v19  ;;  %v1649_v38 = vmul.f32 %v1637_v56, %v1632_v44 }
 0x1f4   :  { %v2046_v46 = vsub.f32 %v4148_v19, %v5676_v43 }
 0x1f6   :  { %1435 = vrot.lane.b32.xlu0 %v4023_v53, %s3272_s0  ;;  %1519 = vrot.lane.b32.xlu2 %v4023_v53, %s3274_s30  ;;  %v2047_v10 = vand.u32 4294901760, %v2046_v46 }
 0x1f7   :  { %1667 = vrot.lane.b32.xlu1 %v4058_v36, %s3277_s10 }
 0x1f8   :  { %2048 = vmatpush.msra.mxu1 %v2047_v10  ;;  %v4169_v60 = vpop.permute.xlu0 %1385  ;;  %v4171_v54 = vpop.permute.xlu2 %1575 }
 0x1f9   :  { %v4173_v9 = vpop.permute.xlu1 %1615  ;;  %v1590_v49 = vsel %vm221_vm5, %v4128_v31, %v4171_v54 }
 0x1fa   :  { %v1631_v33 = vsel %vm260_vm8, %v4069_v47, %v4173_v9 }
 0x1fb   :  { %v1645_v42 = vmul.f32 %v1637_v56, %v1631_v33 }
 0x1fd   :  { %v1885_v41 = vrot.slane %v1645_v42, 2 }
 0x1fe   :  { %1967 = vperm.xlu0 %3264, %v1963_v48   ;;  %1433 = vrot.lane.b32.xlu2 %v4011_v35, %s3272_s0 }
 0x1ff   :  { %1477 = vrot.lane.b32.xlu1 %v4023_v53, %s3273_s29 }
 0x200   :  { %v4182_v13 = vpop.permute.xlu0 %1657  ;;  %v4184_v6 = vpop.permute.xlu2 %1703 }
 0x201   :  { %5789 = vst [vmem:[#allocation14_spill] sm:$0xff] %v4184_v6  ;;  %v4191_v62 = vpop.permute.xlu1 %1699  ;;  %v1673_v63 = vsel %vm299_vm9, %v4094_v14, %v4182_v13 }
 0x202   :  { %v1715_v11 = vsel %vm338_vm15, %v4090_v59, %v4191_v62  ;;  %v1687_v18 = vmul.f32 %v1679_v51, %v1673_v63 }
 0x203   :  { %v1729_v57 = vmul.f32 %v1721_v20, %v1715_v11  ;;  %v1607_v20 = vmul.f32 %v1595_v45, %v1590_v49  ;;  %v1889_v11 = vrot.slane %v1649_v38, 2 }
 0x204   :  { %v1913_v48 = vrot.slane %v1687_v18, 1  ;;  %v4261_v18 = vld [vmem:[%s5667_s1 + $0x3] ss:$8 sm:$0xf] }
 0x205   :  { %v4218_v17 = vand.u32 4294901760, %v1729_v57  ;;  %v1890_v63 = vsel %vm449_vm11, %v1885_v41, %v1889_v11  ;;  %5793 = vst [vmem:[#allocation18_spill] sm:$0xff] %v4261_v18  ;;  %v1536_v11 = vperm.slane %v4261_v18, 1 }
 0x206   :  { %1391 = vrot.lane.b32.xlu2 %v4011_v35, %s3271_s28  ;;  %v1957_v49 = vsel %vm463_vm12, %v1890_v63, %v1913_v48 }
 0x207   :  { %5790 = vst [vmem:[#allocation15_spill] sm:$0xff] %v4218_v17  ;;  %1393 = vrot.lane.b32.xlu1 %v4023_v53, %s3271_s28  ;;  %2002 = vmatpush.msra.mxu0 %v4218_v17  ;;  %v4234_v4 = vsub.f32 %v1729_v57, %v4218_v17  ;;  %v1861_v57 = vrot.slane %v1607_v20, 3 }
 0x208   :  { %2175 = vmatpush.msra.mxu3 %v4218_v17  ;;  %v4237_v24 = vpop.permute.xlu0 %1513  ;;  %v4239_v21 = vpop.permute.xlu2 %1577 }
 0x209   :  { %5791 = vst [vmem:[#allocation16_spill] sm:$0xff] %v4237_v24  ;;  %2128 = vmatpush.msra.mxu2 %v4234_v4  ;;  %v1574_v35 = vpop.permute.xlu1 %1573  ;;  %v5677_v16 = vand.u32 4294901760, %v4234_v4  ;;  %v1529_v63 = vsel %vm166_vm2, %v4101_v0, %v4237_v24 }
 0x20a   :  { %v1589_v39 = vsel %vm221_vm5, %v4075_v22, %v1574_v35  ;;  %v1587_v59 = vsel %vm221_vm5, %v1574_v35, %v4239_v21 }
 0x20b   :  { %v1603_v46 = vmul.f32 %v1595_v45, %v1589_v39  ;;  %v2052_v10 = vsub.f32 %v4234_v4, %v5677_v16 }
 0x20d   :  { %v1857_v33 = vrot.slane %v1603_v46, 3  ;;  %v2053_v56 = vand.u32 4294901760, %v2052_v10  ;;  %v4268_v46 = vand.u32 4294901760, %v1957_v49 }
 0x20f   :  { %v1862_v44 = vsel %vm473_vm14, %v1857_v33, %v1861_v57  ;;  %2054 = vmatpush.msra.mxu1 %v2053_v56  ;;  %5794 = vst [vmem:[#allocation19_spill] sm:$0xff] %v4268_v46  ;;  %v1949_v10 = vsel %vm473_vm14, %v3980_v28, %v1857_v33 }
 0x210   :  { %v4252_v43 = vpop.permute.xlu0 %1619  ;;  %v4254_v42 = vpop.permute.xlu2 %1663  ;;  %v1953_v20 = vsel %vm449_vm11, %v1862_v44, %v1885_v41  ;;  %v4281_v41 = vsub.f32 %v1957_v49, %v4268_v46 }
 0x211   :  { %5792 = vst [vmem:[#allocation17_spill] sm:$0xff] %v4254_v42  ;;  %v4256_v45 = vpop.permute.xlu1 %1659  ;;  %v4273_v56 = vand.u32 4294901760, %v1953_v20  ;;  %v1629_v35 = vsel %vm260_vm8, %v4173_v9, %v4252_v43 }
 0x212   :  { %v1674_v38 = vsel %vm299_vm9, %v4092_v61, %v4256_v45  ;;  %v1638_v61 = vperm.slane %v4196_v5, 1 }
 0x213   :  { %v1691_v39 = vmul.f32 %v1679_v51, %v1674_v38  ;;  %5795 = vst [vmem:[#allocation20_spill] sm:$0xff] %v4273_v56  ;;  %v4283_v51 = vand.u32 4294901760, %v1949_v10  ;;  %v4291_v38 = vmul.f32 %v1536_v11, %v1529_v63  ;;  %v4296_v15 = vsub.f32 %v1953_v20, %v4273_v56 }
 0x214   :  { %v1596_v20 = vperm.slane %v4201_v34, 1 }
 0x215   :  { %v1917_v57 = vrot.slane %v1691_v39, 1  ;;  %5796 = vst [vmem:[#allocation21_spill] sm:$0xff] %v4283_v51  ;;  %v4308_v63 = vsub.f32 %v1949_v10, %v4283_v51 }
 0x216   :  { %v1604_v27 = vmul.f32 %v1596_v20, %v1587_v59  ;;  %v5804_v59 = vand.u32 4294901760, %v4296_v15 }
 0x217   :  { %v1918_v16 = vsel %vm463_vm12, %v1913_v48, %v1917_v57 }
 0x218   :  { %v4285_v44 = vpop.permute.xlu0 %1705  ;;  %v4287_v28 = vpop.permute.xlu2 %1521  ;;  %v4289_v33 = vand.u32 4294901760, %v1918_v16  ;;  %v2070_v22 = vsub.f32 %v4296_v15, %v5804_v59  ;;  %v1858_v24 = vrot.slane %v1604_v27, 3 }
 0x219   :  { %5797 = vst [vmem:[#allocation22_spill] sm:$0xff] %v4285_v44  ;;  %v4293_v39 = vpop.permute.xlu1 %1515 }
 0x21a   :  { %5798 = vst [vmem:[#allocation23_spill] sm:$0xff] %v4287_v28  ;;  %v1530_v48 = vsel %vm166_vm2, %v4156_v50, %v4293_v39  ;;  %2004 = vmatpush.msra.mxu0 %v4289_v33  ;;  %2177 = vmatpush.msra.mxu3 %v4289_v33  ;;  %v4305_v57 = vsub.f32 %v1918_v16, %v4289_v33  ;;  %v5685_v16 = vrot.slane %v4291_v38, 5 }
 0x21b   :  { %5799 = vst [vmem:[#allocation24_spill] sm:$0xff] %v4289_v33  ;;  %v1548_v49 = vmul.f32 %v1536_v11, %v1530_v48  ;;  %v5801_v48 = vand.u32 4294901760, %v4281_v41 }
 0x21c   :  { %5800 = vst [vmem:[#allocation25_spill] sm:$0xff] %v4293_v39  ;;  %2006 = vmatpush.msra.mxu0 %v4268_v46  ;;  %2179 = vmatpush.msra.mxu3 %v4268_v46  ;;  %v5686_v10 = vand.u32 4294901760, %v4305_v57 }
 0x21d   :  { %v1807_v11 = vrot.slane %v1548_v49, 5  ;;  %2131 = vmatpush.msra.mxu2 %v4305_v57  ;;  %v2064_v14 = vsub.f32 %v4281_v41, %v5801_v48 }
 0x21e   :  { %2008 = vmatpush.msra.mxu0 %v4273_v56  ;;  %2181 = vmatpush.msra.mxu3 %v4273_v56  ;;  %v2058_v49 = vsub.f32 %v4305_v57, %v5686_v10 }
 0x21f   :  { %v4331_v31 = vsel %vm444_vm7, %v5685_v16, %v1807_v11  ;;  %2134 = vmatpush.msra.mxu2 %v4281_v41  ;;  %v1646_v16 = vmul.f32 %v1638_v61, %v1629_v35  ;;  %v2065_v36 = vand.u32 4294901760, %v2064_v14  ;;  %v5805_v35 = vand.u32 4294901760, %v4308_v63 }
 0x220   :  { %2010 = vmatpush.msra.mxu0 %v4283_v51  ;;  %2183 = vmatpush.msra.mxu3 %v4283_v51  ;;  %v4343_v26 = vpop.permute.xlu0 %1579  ;;  %v4345_v11 = vpop.permute.xlu2 %1395  ;;  %v2059_v9 = vand.u32 4294901760, %v2058_v49 }
 0x221   :  { %5802 = vst [vmem:[#allocation26_spill] sm:$0xff] %v4343_v26  ;;  %2137 = vmatpush.msra.mxu2 %v4296_v15  ;;  %v1588_v10 = vsel %vm221_vm5, %v4171_v54, %v4343_v26  ;;  %v4352_v48 = vpop.permute.xlu1 %1661  ;;  %v2076_v47 = vsub.f32 %v4308_v63, %v5805_v35  ;;  %v1886_v51 = vrot.slane %v1646_v16, 2  ;;  %v2071_v54 = vand.u32 4294901760, %v2070_v22 }
 0x222   :  { %5803 = vst [vmem:[#allocation27_spill] sm:$0xff] %v4345_v11  ;;  %v1608_v39 = vmul.f32 %v1596_v20, %v1588_v10  ;;  %2060 = vmatpush.msra.mxu1 %v2059_v9  ;;  %v1671_v20 = vsel %vm299_vm9, %v4182_v13, %v4352_v48  ;;  %v1680_v9 = vperm.slane %v4189_v8, 1  ;;  %v1535_v16 = vperm.slane %v4261_v18, 0 }
 0x223   :  { %2140 = vmatpush.msra.mxu2 %v4308_v63  ;;  %v2077_v10 = vand.u32 4294901760, %v2076_v47  ;;  %v1554_v47 = vperm.slane %v3958_v32, 1  ;;  %v1713_v35 = vsel %vm338_vm15, %v4191_v62, %v4184_v6 }
 0x224   :  { %v1863_v53 = vrot.slane %v1608_v39, 3  ;;  %2066 = vmatpush.msra.mxu1 %v2065_v36  ;;  %v1722_v39 = vperm.slane %v4121_v1, 1 }
 0x226   :  { %v1864_v49 = vsel %vm473_vm14, %v1858_v24, %v1863_v53  ;;  %2072 = vmatpush.msra.mxu1 %v2071_v54  ;;  %v4376_v53 = vmul.f32 %v1680_v9, %v1671_v20  ;;  %v1566_v54 = vmul.f32 %v1554_v47, %v3998_v23 }
 0x227   :  { %v4367_v14 = vsel %vm449_vm11, %v1864_v49, %v1886_v51  ;;  %v1531_v49 = vsel %vm166_vm2, %v4287_v28, %v4101_v0  ;;  %v1487_v28 = vsel %vm127_vm3, %v4105_v40, %v4114_v25 }
 0x228   :  { %v4370_v59 = vpop.permute.xlu0 %1479  ;;  %v4372_v27 = vpop.permute.xlu2 %1439  ;;  %2078 = vmatpush.msra.mxu1 %v2077_v10  ;;  %v5695_v32 = vrot.slane %v4376_v53, 1  ;;  %v1730_v10 = vmul.f32 %v1722_v39, %v1713_v35  ;;  %v1835_v0 = vrot.slane %v1566_v54, 4  ;;  %v4427_v54 = vld [vmem:[%s5667_s1 + $0x1] ss:$8 sm:$0xf]  ;;  %v5819_v25 = vrot.slane %v4376_v53, 1 }
 0x229   :  { %5806 = vst [vmem:[#allocation28_spill] sm:$0xff] %v4370_v59  ;;  %v4374_v36 = vpop.permute.xlu1 %1621  ;;  %v1451_v6 = vperm.slane %v4427_v54, 0 }
 0x22a   :  { %5807 = vst [vmem:[#allocation29_spill] sm:$0xff] %v4372_v27  ;;  %v1630_v22 = vsel %vm260_vm8, %v4154_v37, %v4374_v36  ;;  %v4417_v35 = vand.u32 4294901760, %v1730_v10 }
 0x22b   :  { %v1650_v13 = vmul.f32 %v1638_v61, %v1630_v22  ;;  %v4396_v61 = vmul.f32 %v1554_v47, %v3988_v29  ;;  %v4399_v22 = vmul.f32 %v1535_v16, %v1531_v49  ;;  %v1714_v49 = vsel %vm338_vm15, %v4130_v12, %v4285_v44  ;;  %v1961_v44 = vld [vmem:[%s5672_s4] sm:$0xff] }
 0x22d   :  { %v1891_v37 = vrot.slane %v1650_v13, 2  ;;  %v5698_v13 = vrot.slane %v4396_v61, 4  ;;  %v5827_v17 = vrot.slane %v4396_v61, 4 }
 0x22f   :  { %v1892_v20 = vsel %vm449_vm11, %v1886_v51, %v1891_v37  ;;  %v5697_v37 = vrot.slane %v4399_v22, 5 }
 0x230   :  { %v4401_v1 = vpop.permute.xlu0 %1523  ;;  %v4403_v62 = vpop.permute.xlu2 %1431  ;;  %v4408_v23 = vsel %vm463_vm12, %v1892_v20, %v5695_v32  ;;  %v1734_v32 = vmul.f32 %v1722_v39, %v1714_v49 }
 0x231   :  { %5808 = vst [vmem:[#allocation30_spill] sm:$0xff] %v4401_v1  ;;  %v1532_v29 = vsel %vm166_vm2, %v4401_v1, %v4156_v50  ;;  %v4414_v47 = vpop.permute.xlu1 %1437 }
 0x232   :  { %5809 = vst [vmem:[#allocation31_spill] sm:$0xff] %v4403_v62  ;;  %v1547_v51 = vmul.f32 %v1535_v16, %v1532_v29  ;;  %v1836_v16 = vsel %vm195_vm0, %v5698_v13, %v1835_v0  ;;  %v1447_v12 = vsel %vm88_vm1, %v4414_v47, %v4082_v2  ;;  %v5810_v0 = vrot.slane %v3967_v30, 4 }
 0x233   :  { %v1950_v20 = vsel %vm473_vm14, %v1836_v16, %v1858_v24  ;;  %v4454_v16 = vsub.f32 %v1730_v10, %v4417_v35  ;;  %v4473_v10 = vmul.f32 %v1451_v6, %v1447_v12  ;;  %v1986_v1 = vsel %vm454_vm10, %v1734_v32, 0 }
 0x234   :  { %v1805_v50 = vrot.slane %v1547_v51, 5  ;;  %v1672_v51 = vsel %vm299_vm9, %v4256_v45, %v4254_v42  ;;  %v1448_v45 = vsel %vm88_vm1, %v4372_v27, %v4152_v52  ;;  %v1489_v12 = vsel %vm127_vm3, %v4370_v59, %v4105_v40 }
 0x235   :  { %5812 = vst [vmem:[#allocation33_spill] sm:$0xff] %v4454_v16  ;;  %v1692_v13 = vmul.f32 %v1680_v9, %v1672_v51  ;;  %v1463_v18 = vmul.f32 %v1451_v6, %v1448_v45  ;;  %v1977_v45 = vsel %vm1975_vm6, %v1961_v44, 0  ;;  %v1405_v40 = vsel %vm50_vm4, %v4345_v11, %v4116_v3 }
 0x236   :  { %v1806_v29 = vsel %vm444_vm7, %v5697_v37, %v1805_v50  ;;  %v4451_v50 = vld [vmem:[%s5667_s1 + $0x2] ss:$8 sm:$0xf]  ;;  %v4523_v46 = vand.u32 4294901760, %v1977_v45  ;;  %v5821_v11 = vand.u32 4294901760, %v4454_v16 }
 0x237   :  { %v1945_v24 = vsel %vm195_vm0, %v1806_v29, %v5810_v0  ;;  %5811 = vst [vmem:[#allocation32_spill] sm:$0xff] %v4451_v50  ;;  %v4466_v29 = vand.u32 4294901760, %v1950_v20  ;;  %v4471_v0 = vld [vmem:[%s5667_s1] ss:$8 sm:$0xf]  ;;  %v1493_v42 = vperm.slane %v4451_v50, 0 }
 0x238   :  { %v4460_v39 = vpop.permute.xlu0 %1473  ;;  %v4462_v49 = vpop.permute.xlu2 %1623  ;;  %v4464_v30 = vand.u32 4294901760, %v1945_v24  ;;  %v1494_v51 = vperm.slane %v4451_v50, 1  ;;  %v1919_v59 = vrot.slane %v1692_v13, 1  ;;  %v1749_v27 = vrot.slane %v1463_v18, 7 }
 0x239   :  { %5813 = vst [vmem:[#allocation34_spill] sm:$0xff] %v4460_v39  ;;  %v4475_v37 = vpop.permute.xlu1 %1429  ;;  %v4499_v56 = vsub.f32 %v1950_v20, %v4466_v29  ;;  %v1501_v32 = vmul.f32 %v1493_v42, %v1489_v12  ;;  %v4528_v18 = vsub.f32 %v4454_v16, %v5821_v11  ;;  %v5822_v12 = vperm.slane %v4471_v0, 0 }
 0x23a   :  { %5814 = vst [vmem:[#allocation35_spill] sm:$0xff] %v4462_v49  ;;  %2012 = vmatpush.msra.mxu0 %v4464_v30  ;;  %2185 = vmatpush.msra.mxu3 %v4464_v30  ;;  %v4489_v9 = vsub.f32 %v1945_v24, %v4464_v30  ;;  %v4514_v6 = vmul.f32 %v1494_v51, %v1487_v28  ;;  %v5823_v28 = vrot.slane %v4473_v10, 7  ;;  %v1452_v16 = vperm.slane %v4427_v54, 1 }
 0x23b   :  { %5815 = vst [vmem:[#allocation36_spill] sm:$0xff] %v4464_v30  ;;  %v4505_v30 = vand.u32 4294901760, %v1986_v1  ;;  %v1920_v44 = vsel %vm463_vm12, %v5819_v25, %v1919_v59  ;;  %v1773_v33 = vrot.slane %v1501_v32, 6  ;;  %v1445_v61 = vsel %vm88_vm1, %v4082_v2, %v4475_v37 }
 0x23c   :  { %5816 = vst [vmem:[#allocation37_spill] sm:$0xff] %v4466_v29  ;;  %2143 = vmatpush.msra.mxu2 %v4489_v9  ;;  %v5714_v24 = vand.u32 4294901760, %v4489_v9  ;;  %v1750_v53 = vsel %vm454_vm10, %v5823_v28, %v1749_v27  ;;  %v1488_v27 = vsel %vm127_vm3, %v4103_v58, %v4460_v39  ;;  %v1446_v2 = vsel %vm88_vm1, %v4152_v52, %v4403_v62 }
 0x23d   :  { %5817 = vst [vmem:[#allocation38_spill] sm:$0xff] %v4489_v9  ;;  %v4538_v59 = vsub.f32 %v1986_v1, %v4505_v30  ;;  %v1937_v32 = vsel %vm468_vm13, %v1750_v53, %v1773_v33  ;;  %v4615_v52 = vand.u32 4294901760, %v4408_v23 }
 0x23e   :  { %5818 = vst [vmem:[#allocation39_spill] sm:$0xff] %v4499_v56  ;;  %v2082_v20 = vsub.f32 %v4489_v9, %v5714_v24  ;;  %v1417_v24 = vmul.f32 %v5822_v12, %v1405_v40  ;;  %v4545_v9 = vand.u32 4294901760, %v1920_v44 }
 0x23f   :  { %5825 = vst [vmem:[#allocation42_spill] sm:$0xff] %v4538_v59  ;;  %v5724_v53 = vand.u32 4294901760, %v4538_v59 }
 0x240   :  { %v4519_v13 = vpop.permute.xlu0 %1389  ;;  %v4521_v50 = vpop.permute.xlu2 %1581  ;;  %v2083_v25 = vand.u32 4294901760, %v2082_v20  ;;  %v4554_v20 = vsub.f32 %v1977_v45, %v4523_v46  ;;  %v4557_v28 = vand.u32 4294901760, %v1417_v24  ;;  %v5828_v45 = vand.u32 4294901760, %v4499_v56 }
 0x241   :  { %5820 = vst [vmem:[#allocation40_spill] sm:$0xff] %v4519_v13  ;;  %v4535_v29 = vpop.permute.xlu1 %1481  ;;  %v4572_v12 = vsub.f32 %v1920_v44, %v4545_v9  ;;  %v4612_v39 = vsub.f32 %v4538_v59, %v5724_v53  ;;  %v5839_v53 = vrot.slane %v4473_v10, 7 }
 0x242   :  { %5824 = vst [vmem:[#allocation41_spill] sm:$0xff] %v4535_v29  ;;  %v1490_v11 = vsel %vm127_vm3, %v4535_v29, %v4103_v58  ;;  %2084 = vmatpush.msra.mxu1 %v2083_v25  ;;  %v1946_v58 = vsel %vm195_vm0, %v4331_v31, %v5827_v17  ;;  %v4579_v17 = vand.u32 4294901760, %v1937_v32  ;;  %v4590_v25 = vand.u32 4294901760, %v4554_v20 }
 0x243   :  { %v1505_v40 = vmul.f32 %v1493_v42, %v1490_v11  ;;  %5826 = vst [vmem:[#allocation43_spill] sm:$0xff] %v4557_v28  ;;  %v1506_v42 = vmul.f32 %v1494_v51, %v1488_v27  ;;  %v4569_v11 = vsub.f32 %v4499_v56, %v5828_v45  ;;  %v5832_v45 = vrot.slane %v4399_v22, 5 }
 0x244   :  { %5829 = vst [vmem:[#allocation44_spill] sm:$0xff] %v4572_v12  ;;  %v4592_v1 = vand.u32 4294901760, %v1946_v58  ;;  %v4602_v51 = vsub.f32 %v1417_v24, %v4557_v28  ;;  %v4605_v22 = vand.u32 4294901760, %v4367_v14  ;;  %v1464_v56 = vmul.f32 %v1452_v16, %v1446_v2 }
 0x245   :  { %v1777_v29 = vrot.slane %v1505_v40, 6  ;;  %5830 = vst [vmem:[#allocation45_spill] sm:$0xff] %v4579_v17  ;;  %v2024_v62 = vsub.f32 %v4554_v20, %v4590_v25  ;;  %v5838_v2 = vrot.slane %v4514_v6, 6 }
 0x246   :  { %5833 = vst [vmem:[#allocation47_spill] sm:$0xff] %v4590_v25  ;;  %v4635_v26 = vsub.f32 %v1946_v58, %v4592_v1 }
 0x247   :  { %v1778_v31 = vsel %vm468_vm13, %v1773_v33, %v1777_v29  ;;  %5834 = vst [vmem:[#allocation48_spill] sm:$0xff] %v4592_v1  ;;  %v1962_v33 = vld [vmem:[%s5672_s4 + $0x8] sm:$0x1] }
 0x248   :  { %v4582_v27 = vpop.permute.xlu0 %1665  ;;  %v4584_v40 = vpop.permute.xlu2 %1709  ;;  %v1941_v44 = vsel %vm444_vm7, %v1778_v31, %v5832_v45  ;;  %v1779_v31 = vrot.slane %v1506_v42, 6  ;;  %v4607_v45 = vmul.f32 %v1452_v16, %v1445_v61  ;;  %v4627_v61 = vsub.f32 %v1937_v32, %v4579_v17 }
 0x249   :  { %5831 = vst [vmem:[#allocation46_spill] sm:$0xff] %v4584_v40  ;;  %v4599_v29 = vpop.permute.xlu1 %1397  ;;  %v4624_v42 = vand.u32 4294901760, %v1941_v44  ;;  %v5837_v40 = vperm.slane %v4471_v0, 0  ;;  %v4645_v16 = vsub.f32 %v4367_v14, %v4605_v22 }
 0x24a   :  { %5835 = vst [vmem:[#allocation49_spill] sm:$0xff] %v4599_v29  ;;  %v1406_v24 = vsel %vm50_vm4, %v4599_v29, %v4169_v60  ;;  %v1780_v58 = vsel %vm468_vm13, %v5838_v2, %v1779_v31 }
 0x24b   :  { %5836 = vst [vmem:[#allocation50_spill] sm:$0xff] %v4624_v42  ;;  %v1421_v59 = vmul.f32 %v5837_v40, %v1406_v24  ;;  %2014 = vmatpush.msra.mxu0 %v4624_v42  ;;  %2187 = vmatpush.msra.mxu3 %v4624_v42  ;;  %v4640_v29 = vsub.f32 %v1941_v44, %v4624_v42  ;;  %v1980_v40 = vsel %vm1975_vm6, %v1962_v33, 0  ;;  %v1746_v24 = vrot.slane %v4607_v45, 7 }
 0x24c   :  { %v4657_v44 = vsub.f32 %v4408_v23, %v4615_v52  ;;  %v5841_v45 = vand.u32 4294901760, %v4572_v12  ;;  %v1404_v23 = vsel %vm50_vm4, %v4169_v60, %v4519_v13  ;;  %v4679_v33 = vand.u32 4294901760, %v2024_v62 }
 0x24d   :  { %v1933_v1 = vsel %vm454_vm10, %v1421_v59, %v5839_v53  ;;  %2016 = vmatpush.msra.mxu0 %v4579_v17  ;;  %2146 = vmatpush.msra.mxu2 %v4640_v29  ;;  %v1751_v59 = vrot.slane %v1464_v56, 7  ;;  %v4681_v31 = vand.u32 4294901760, %v1980_v40  ;;  %v2354_v60 = vand.u32 4294901760, %v4612_v39 }
 0x24e   :  { %v4661_v14 = vand.u32 4294901760, %v1933_v1  ;;  %v4668_v10 = vsub.f32 %v4572_v12, %v5841_v45  ;;  %2189 = vmatpush.msra.mxu3 %v4579_v17  ;;  %5842 = vst [vmem:[#allocation52_spill] sm:$0xff] %v4679_v33  ;;  %v5844_v13 = vrot.slane %v4291_v38, 5  ;;  %v1627_v62 = vsel %vm260_vm8, %v4252_v43, %v4462_v49 }
 0x24f   :  { %2149 = vmatpush.msra.mxu2 %v4627_v61  ;;  %v1752_v32 = vsel %vm454_vm10, %v1746_v24, %v1751_v59  ;;  %v5845_v42 = vand.u32 4294901760, %v4602_v51  ;;  %v5846_v38 = vperm.slane %v4471_v0, 1  ;;  %v5847_v43 = vand.u32 4294901760, %v4640_v29 }
 0x250   :  { %5840 = vst [vmem:[#allocation51_spill] sm:$0xff] %v4661_v14  ;;  %v4675_v53 = vpop.permute.xlu0 %1475  ;;  %v4677_v2 = vpop.permute.xlu2 %1519  ;;  %2018 = vmatpush.msra.mxu0 %v4661_v14  ;;  %v1942_v12 = vsel %vm444_vm7, %v1780_v58, %v5844_v13  ;;  %2191 = vmatpush.msra.mxu3 %v4661_v14  ;;  %v4709_v13 = vsub.f32 %v1933_v1, %v4661_v14  ;;  %v5848_v59 = vand.u32 4294901760, %v4627_v61  ;;  %v5850_v49 = vand.u32 4294901760, %v4148_v19 }
 0x251   :  { %v4686_v56 = vpop.permute.xlu1 %1387  ;;  %v4703_v39 = vsub.f32 %v4602_v51, %v5845_v42  ;;  %v1422_v45 = vmul.f32 %v5846_v38, %v1404_v23  ;;  %v2088_v58 = vsub.f32 %v4640_v29, %v5847_v43  ;;  %v2366_v42 = vand.u32 4294901760, %v4668_v10 }
 0x252   :  { %5843 = vst [vmem:[#allocation53_spill] sm:$0xff] %v4686_v56  ;;  %2020 = vmatpush.msra.mxu0 %v4557_v28  ;;  %v2094_v17 = vsub.f32 %v4627_v61, %v5848_v59  ;;  %2193 = vmatpush.msra.mxu3 %v4557_v28  ;;  %v4722_v38 = vsub.f32 %v1980_v40, %v4681_v31  ;;  %v4724_v1 = vand.u32 4294901760, %v1942_v12  ;;  %v5743_v10 = vand.u32 4294901760, %v4709_v13 }
 0x253   :  { %2026 = vmatmul.f32.vlgmr.msra.gmra.mxu0 %v4679_v33  ;;  %v1403_v43 = vsel %vm50_vm4, %v4116_v3, %v4686_v56  ;;  %2152 = vmatpush.msra.mxu2 %v4709_v13  ;;  %v2089_v59 = vand.u32 4294901760, %v2088_v58  ;;  %v5851_v23 = vrot.slane %v4514_v6, 6  ;;  %v5852_v28 = vperm.slane %v4196_v5, 2 }
 0x254   :  { %5849 = vst [vmem:[#allocation54_spill] sm:$0xff] %v4722_v38  ;;  %2215 = vmatpush.msrb.mxu0 %v5850_v49  ;;  %v1669_v3 = vsel %vm299_vm9, %v4352_v48, %v4582_v27  ;;  %2355 = vmatpush.msrb.mxu3 %v2354_v60  ;;  %v5853_v19 = vand.u32 4294901760, %v4657_v44  ;;  %v1934_v6 = vsel %vm454_vm10, %v1422_v45, %v1746_v24  ;;  %v5854_v48 = vperm.slane %v4471_v0, 1 }
 0x255   :  { %v1938_v40 = vsel %vm468_vm13, %v1752_v32, %v5851_v23  ;;  %v4739_v14 = vmul.f32 %v5852_v28, %v1627_v62  ;;  %2090 = vmatpush.msra.mxu1 %v2089_v59  ;;  %2155 = vmatpush.msra.mxu2 %v4602_v51  ;;  %v2095_v32 = vand.u32 4294901760, %v2094_v17  ;;  %v2100_v28 = vsub.f32 %v4709_v13, %v5743_v10 }
 0x256   :  { %v2371_v49 = vsub.f32 %v4657_v44, %v5853_v19  ;;  %v1418_v60 = vmul.f32 %v5854_v48, %v1403_v43  ;;  %v5855_v23 = vand.u32 4294901760, %v4234_v4  ;;  %v4763_v45 = vand.u32 4294901760, %v4722_v38  ;;  %2158 = vmatmul.f32.vlgmr.msra.gmra.mxu2 %v4554_v20  ;;  %2197 = vmatmul.f32.vlgmr.msra.gmra.mxu3 %v4590_v25  ;;  %v5907_v25 = vld [vmem:[#allocation44_spill] sm:$0xff] }
 0x257   :  { %2307 = vmatpush.msrb.mxu2 %v4505_v30  ;;  %v4766_v17 = vsub.f32 %v1942_v12, %v4724_v1  ;;  %v4768_v59 = vand.u32 4294901760, %v1938_v40  ;;  %v5857_v10 = vperm.slane %v4189_v8, 2  ;;  %2096 = vmatpush.msra.mxu1 %v2095_v32  ;;  %v5858_v4 = vand.u32 4294901760, %v4528_v18 }
 0x258   :  { %2219 = vmatpush.msrb.mxu0 %v5855_v23  ;;  %v4760_v19 = vpop.permute.xlu0 %1625  ;;  %v1434_v24 = vpop.permute.xlu2 %1433  ;;  %5856 = vst [vmem:[#allocation55_spill] sm:$0xff] %v4763_v45  ;;  %v2101_v43 = vand.u32 4294901760, %v2100_v28  ;;  %v4785_v58 = vand.u32 4294901760, %v1934_v6  ;;  %v5860_v18 = vperm.slane %v4196_v5, 2  ;;  %v2107_v32 = vand.u32 4294901760, %v4703_v39 }
 0x259   :  { %v4772_v62 = vmul.f32 %v5857_v10, %v1669_v3  ;;  %2361 = vmatpush.msrb.mxu3 %v5858_v4  ;;  %v1628_v48 = vsel %vm260_vm8, %v4374_v36, %v4760_v19  ;;  %v1441_v12 = vsel %vm88_vm1, %v1434_v24, %v4414_v47  ;;  %v4783_v23 = vpop.permute.xlu1 %1707  ;;  %v5859_v10 = vand.u32 4294901760, %v4305_v57  ;;  %2309 = vmatpush.msrb.mxu2 %v4417_v35 }
 0x25a   :  { %v1651_v3 = vmul.f32 %v5860_v18, %v1628_v48  ;;  %v1443_v36 = vsel %vm88_vm1, %v4475_v37, %v1434_v24  ;;  %v5861_v47 = vperm.slane %v4427_v54, 2  ;;  %v5863_v4 = vperm.slane %v4427_v54, 3  ;;  %2102 = vmatpush.msra.mxu1 %v2101_v43 }
 0x25b   :  { %2223 = vmatpush.msrb.mxu0 %v5859_v10  ;;  %2367 = vmatpush.msrb.mxu3 %v2366_v42  ;;  %v2372_v10 = vand.u32 4294901760, %v2371_v49  ;;  %v5864_v48 = vand.u32 4294901760, %v4645_v16  ;;  %v1887_v37 = vrot.slane %v4739_v14, 2  ;;  %v4809_v24 = vand.u32 4294901760, %v1418_v60 }
 0x25c   :  { %v4799_v28 = vmul.f32 %v5861_v47, %v1443_v36  ;;  %v4803_v57 = vmul.f32 %v5863_v4, %v1441_v12  ;;  %v1893_v39 = vrot.slane %v1651_v3, 2  ;;  %v4813_v42 = vsub.f32 %v1938_v40, %v4768_v59  ;;  %2311 = vmatpush.msrb.mxu2 %v4545_v9  ;;  %2108 = vmatpush.msra.mxu1 %v2107_v32 }
 0x25d   :  { %v2377_v18 = vsub.f32 %v4645_v16, %v5864_v48  ;;  %v1585_v49 = vsel %vm221_vm5, %v4239_v21, %v4521_v50  ;;  %v5744_v12 = vrot.slane %v4772_v62, 1  ;;  %v5865_v36 = vand.u32 4294901760, %v4281_v41  ;;  %2373 = vmatpush.msrb.mxu3 %v2372_v10  ;;  %2110 = vmatmul.f32.vlgmr.msra.gmra.mxu1 %v4523_v46  ;;  %v5877_v10 = vld [vmem:[#allocation37_spill] sm:$0xff] }
 0x25e   :  { %5862 = vst [vmem:[#allocation56_spill] sm:$0xff] %v4799_v28  ;;  %v2032_v14 = vsub.f32 %v4722_v38, %v4763_v45  ;;  %v5745_v43 = vand.u32 4294901760, %v4766_v17  ;;  %v4827_v40 = vsub.f32 %v1934_v6, %v4785_v58  ;;  %v1894_v3 = vsel %vm449_vm11, %v1887_v37, %v1893_v39  ;;  %2271 = vmatpush.msrb.mxu1 %v4139_v7 }
 0x25f   :  { %2227 = vmatpush.msrb.mxu0 %v5865_v36  ;;  %v5866_v21 = vand.u32 4294901760, %v4296_v15  ;;  %v2378_v41 = vand.u32 4294901760, %v2377_v18  ;;  %v5867_v47 = vand.u32 4294901760, %v4635_v26  ;;  %v4839_v48 = vsel %vm463_vm12, %v1894_v3, %v5744_v12  ;;  %2313 = vmatpush.msrb.mxu2 %v4615_v52  ;;  %v5876_v12 = vld [vmem:[#allocation24_spill] sm:$0xff] }
 0x260   :  { %v5868_v6 = vperm.slane %v4201_v34, 2  ;;  %v4846_v32 = vsub.f32 %v1418_v60, %v4809_v24  ;;  %v4850_v15 = vpop.permute.xlu0 %1583  ;;  %v5870_v18 = vand.u32 4294901760, %v4308_v63  ;;  %v2384_v36 = vand.u32 4294901760, %v4569_v11  ;;  %2163 = vmatmul.f32.gmra.mxu2 %v4722_v38  ;;  %2203 = vmatmul.f32.gmra.mxu3 %v4763_v45  ;;  %v5893_v38 = vld [vmem:[#allocation30_spill] sm:$0xff]  ;;  %v5905_v45 = vld [vmem:[#allocation45_spill] sm:$0xff] }
 0x261   :  { %2231 = vmatpush.msrb.mxu0 %v5866_v21  ;;  %v2389_v4 = vsub.f32 %v4635_v26, %v5867_v47  ;;  %5869 = vst [vmem:[#allocation57_spill] sm:$0xff] %v4850_v15  ;;  %2379 = vmatpush.msrb.mxu3 %v2378_v41  ;;  %v4856_v3 = vand.u32 4294901760, %v2032_v14  ;;  %v4862_v7 = vpop.permute.xlu1 %1517  ;;  %v2395_v21 = vsub.f32 %v4766_v17, %v5745_v43  ;;  %v5872_v47 = vld [vmem:[#allocation15_spill] sm:$0xff]  ;;  %v5748_v14 = vand.u32 4294901760, %v4827_v40  ;;  %v5874_v41 = vld [vmem:[#allocation38_spill] sm:$0xff] }
 0x262   :  { %v4843_v39 = vmul.f32 %v5868_v6, %v1585_v49  ;;  %v5871_v49 = vld [vmem:[#allocation26_spill] sm:$0xff]  ;;  %2273 = vmatpush.msrb.mxu1 %v5872_v47  ;;  %2315 = vmatpush.msrb.mxu2 %v4605_v22  ;;  %v5873_v63 = vmov %v5868_v6  ;;  %v5875_v6 = vand.u32 4294901760, %v5874_v41  ;;  %v5878_v47 = vand.u32 4294901760, %v4813_v42  ;;  %v5881_v41 = vld [vmem:[#allocation48_spill] sm:$0xff] }
 0x263   :  { %2235 = vmatpush.msrb.mxu0 %v5870_v18  ;;  %v1586_v60 = vsel %vm221_vm5, %v5871_v49, %v4850_v15  ;;  %2385 = vmatpush.msrb.mxu3 %v2384_v36  ;;  %v2390_v18 = vand.u32 4294901760, %v2389_v4  ;;  %v2396_v36 = vand.u32 4294901760, %v2395_v21  ;;  %v5882_v21 = vand.u32 4294901760, %v4627_v61 }
 0x264   :  { %v1609_v11 = vmul.f32 %v5873_v63, %v1586_v60  ;;  %v5749_v49 = vrot.slane %v4843_v39, 3  ;;  %2275 = vmatpush.msrb.mxu1 %v5876_v12  ;;  %2317 = vmatpush.msrb.mxu2 %v5877_v10  ;;  %v2401_v56 = vsub.f32 %v4813_v42, %v5878_v47  ;;  %v5747_v60 = vand.u32 4294901760, %v4846_v32  ;;  %v5880_v12 = vld [vmem:[#allocation19_spill] sm:$0xff]  ;;  %v5883_v47 = vld [vmem:[#allocation20_spill] sm:$0xff] }
 0x265   :  { %2239 = vmatpush.msrb.mxu0 %v5875_v6  ;;  %2391 = vmatpush.msrb.mxu3 %v2390_v18  ;;  %v5879_v63 = vand.u32 4294901760, %v4640_v29  ;;  %v5885_v61 = vand.u32 4294901760, %v4709_v13  ;;  %v5890_v13 = vperm.slane %v4427_v54, 2 }
 0x266   :  { %v1865_v43 = vrot.slane %v1609_v11, 3  ;;  %2034 = vmatmul.f32.gmra.mxu0 %v4856_v3  ;;  %2277 = vmatpush.msrb.mxu1 %v5880_v12  ;;  %v2407_v11 = vsub.f32 %v4827_v40, %v5748_v14  ;;  %v2413_v29 = vsub.f32 %v4846_v32, %v5747_v60  ;;  %v5888_v60 = vld [vmem:[#allocation23_spill] sm:$0xff] }
 0x267   :  { %2243 = vmatpush.msrb.mxu0 %v5879_v63  ;;  %2319 = vmatpush.msrb.mxu2 %v5881_v41  ;;  %v5884_v63 = vld [vmem:[#allocation29_spill] sm:$0xff]  ;;  %v1525_v14 = vsel %vm166_vm2, %v4862_v7, %v5888_v60  ;;  %v1526_v60 = vsel %vm166_vm2, %v4677_v2, %v5893_v38  ;;  %v5897_v38 = vrot.slane %v4803_v57, 7 }
 0x268   :  { %v1866_v4 = vsel %vm473_vm14, %v5749_v49, %v1865_v43  ;;  %2397 = vmatpush.msrb.mxu3 %v2396_v36  ;;  %v2402_v43 = vand.u32 4294901760, %v2401_v56  ;;  %v1436_v18 = vpop.permute.xlu0 %1435  ;;  %2279 = vmatpush.msrb.mxu1 %v5883_v47  ;;  %v2408_v56 = vand.u32 4294901760, %v2407_v11  ;;  %v5891_v11 = vld [vmem:[#allocation18_spill] sm:$0xff]  ;;  %v5896_v49 = vld [vmem:[#allocation28_spill] sm:$0xff] }
 0x269   :  { %v4893_v6 = vsel %vm449_vm11, %v1866_v4, %v1887_v37  ;;  %2247 = vmatpush.msrb.mxu0 %v5882_v21  ;;  %2321 = vmatpush.msrb.mxu2 %v4724_v1  ;;  %v1442_v37 = vsel %vm88_vm1, %v1436_v18, %v5884_v63  ;;  %v4906_v36 = vpop.permute.xlu1 %1667  ;;  %v5886_v4 = vld [vmem:[#allocation31_spill] sm:$0xff]  ;;  %v5887_v21 = vperm.slane %v4427_v54, 3  ;;  %v5889_v63 = vld [vmem:[#allocation21_spill] sm:$0xff]  ;;  %v5894_v54 = vand.u32 4294901760, %v4602_v51 }
 0x26a   :  { %2403 = vmatpush.msrb.mxu3 %v2402_v43  ;;  %v1444_v12 = vsel %vm88_vm1, %v5886_v4, %v1436_v18  ;;  %2281 = vmatpush.msrb.mxu1 %v5889_v63  ;;  %v2414_v18 = vand.u32 4294901760, %v2413_v29  ;;  %v5892_v4 = vld [vmem:[#allocation32_spill] sm:$0xff]  ;;  %v5752_v63 = vrot.slane %v4799_v28, 7  ;;  %v1483_v29 = vsel %vm127_vm3, %v4675_v53, %v5896_v49 }
 0x26b   :  { %2251 = vmatpush.msrb.mxu0 %v5885_v61  ;;  %v1466_v47 = vmul.f32 %v5887_v21, %v1442_v37  ;;  %v1465_v43 = vmul.f32 %v5890_v13, %v1444_v12  ;;  %v1538_v61 = vperm.slane %v5891_v11, 3  ;;  %2323 = vmatpush.msrb.mxu2 %v4768_v59  ;;  %v1496_v21 = vperm.slane %v5892_v4, 3  ;;  %v5895_v12 = vld [vmem:[#allocation36_spill] sm:$0xff] }
 0x26c   :  { %2409 = vmatpush.msrb.mxu3 %v2408_v56  ;;  %2283 = vmatpush.msrb.mxu1 %v5895_v12  ;;  %v4948_v51 = vld [vmem:[%s5667_s1 + $0x4] ss:$8 sm:$0xf] }
 0x26d   :  { %v1755_v37 = vrot.slane %v1466_v47, 7  ;;  %2255 = vmatpush.msrb.mxu0 %v5894_v54  ;;  %v1753_v13 = vrot.slane %v1465_v43, 7  ;;  %v4939_v56 = vmul.f32 %v1538_v61, %v1525_v14  ;;  %2325 = vmatpush.msrb.mxu2 %v4785_v58  ;;  %v1550_v49 = vmul.f32 %v1538_v61, %v1526_v60  ;;  %v5900_v54 = vld [vmem:[#allocation50_spill] sm:$0xff]  ;;  %v5901_v43 = vld [vmem:[#allocation33_spill] sm:$0xff]  ;;  %v3267_v60 = vld [vmem:[%s5670_s6 + $0x18] sm:$0xff] }
 0x26e   :  { %2415 = vmatpush.msrb.mxu3 %v2414_v18  ;;  %2114 = vmatmul.f32.gmra.mxu1 %v4681_v31  ;;  %v5899_v18 = vld [vmem:[#allocation42_spill] sm:$0xff]  ;;  %v5908_v15 = vand.u32 4294901760, %v5901_v43 }
 0x26f   :  { %v1756_v47 = vsel %vm454_vm10, %v5897_v38, %v1755_v37  ;;  %2257 = vmatmul.f32.vlgmr.msrb.gmra.mxu0 %v4523_v46  ;;  %v4956_v14 = vsel %vm454_vm10, %v5752_v63, %v1753_v13  ;;  %v1504_v37 = vmul.f32 %v1496_v21, %v1483_v29  ;;  %2285 = vmatpush.msrb.mxu1 %v5900_v54  ;;  %v5902_v13 = vld [vmem:[#allocation41_spill] sm:$0xff]  ;;  %v5903_v29 = vperm.slane %v4948_v51, 3 }
 0x270   :  { %5898 = vst [vmem:[#allocation26_spill] sm:$0xff] %v4956_v14  ;;  %2432 = vmatpush.msra.mxu0 %v5899_v18  ;;  %2578 = vmatpush.msra.mxu3 %v4505_v30  ;;  %v5904_v63 = vand.u32 4294901760, %v5899_v18  ;;  %v5910_v18 = vld [vmem:[#allocation22_spill] sm:$0xff] }
 0x271   :  { %2327 = vmatpush.msrb.mxu2 %v4809_v24  ;;  %v4962_v12 = vpop.permute.xlu1 %1477  ;;  %v4976_v54 = vmul.f32 %v3267_v60, %v5903_v29  ;;  %2287 = vmatpush.msrb.mxu1 %v5905_v45  ;;  %v1776_v14 = vrot.slane %v1504_v37, 6  ;;  %v5909_v29 = vld [vmem:[#allocation46_spill] sm:$0xff]  ;;  %v1555_v37 = vperm.slane %v4948_v51, 2 }
 0x272   :  { %2333 = vmatmul.f32.vlgmr.msrb.gmra.mxu2 %v4679_v33  ;;  %2435 = vmatpush.msra.mxu0 %v5901_v43  ;;  %v1484_v61 = vsel %vm127_vm3, %v4962_v12, %v5902_v13  ;;  %v1811_v33 = vrot.slane %v1550_v49, 5  ;;  %v5906_v13 = vld [vmem:[#allocation11_spill] sm:$0xff] }
 0x273   :  { %2522 = vmatpush.msra.mxu2 %v5904_v63  ;;  %2580 = vmatpush.msra.mxu3 %v4417_v35  ;;  %v1508_v38 = vmul.f32 %v1496_v21, %v1484_v61  ;;  %v1723_v28 = vperm.slane %v5906_v13, 2  ;;  %v1712_v63 = vsel %vm338_vm15, %v5910_v18, %v5909_v29  ;;  %v5911_v21 = vrot.slane %v4939_v56, 5  ;;  %v5912_v49 = vld [vmem:[#allocation51_spill] sm:$0xff]  ;;  %v5917_v18 = vld [vmem:[#allocation2_spill] sm:$0xff] }
 0x274   :  { %2417 = vmatmul.f32.vlgmr.msrb.gmra.mxu3 %v4523_v46  ;;  %2438 = vmatpush.msra.mxu0 %v5907_v25  ;;  %v5916_v13 = vld [vmem:[#allocation43_spill] sm:$0xff] }
 0x275   :  { %2526 = vmatpush.msra.mxu2 %v5908_v15  ;;  %v1783_v60 = vrot.slane %v1508_v38, 6  ;;  %v1812_v45 = vsel %vm444_vm7, %v5911_v21, %v1811_v33  ;;  %2582 = vmatpush.msra.mxu3 %v4545_v9  ;;  %v5913_v15 = vand.u32 4294901760, %v5907_v25  ;;  %v5915_v38 = vld [vmem:[#allocation17_spill] sm:$0xff]  ;;  %v1567_v21 = vmul.f32 %v1555_v37, %v5917_v18  ;;  %v3268_v18 = vld [vmem:[%s5670_s6 + $0x10] sm:$0xff] }
 0x276   :  { %2289 = vmatpush.msrb.mxu1 %v5912_v49  ;;  %2441 = vmatpush.msra.mxu0 %v4657_v44  ;;  %v1670_v33 = vsel %vm299_vm9, %v5915_v38, %v4906_v36  ;;  %v1735_v49 = vmul.f32 %v1723_v28, %v1712_v63  ;;  %v5919_v38 = vand.u32 4294901760, %v4657_v44  ;;  %v5031_v61 = vmul.f32 %v3268_v18, %v1555_v37 }
 0x277   :  { %2530 = vmatpush.msra.mxu2 %v5913_v15  ;;  %v5002_v43 = vsel %vm468_vm13, %v1776_v14, %v1783_v60  ;;  %2584 = vmatpush.msra.mxu3 %v4615_v52  ;;  %v5918_v60 = vrot.slane %v4976_v54, 4  ;;  %v5923_v44 = vperm.slane %v4471_v0, 3  ;;  %v1837_v37 = vrot.slane %v1567_v21, 4  ;;  %v5928_v21 = vld [vmem:[#allocation16_spill] sm:$0xff] }
 0x278   :  { %5914 = vst [vmem:[#allocation15_spill] sm:$0xff] %v5002_v43  ;;  %2291 = vmatpush.msrb.mxu1 %v5916_v13  ;;  %2444 = vmatpush.msra.mxu0 %v4645_v16  ;;  %v5920_v13 = vld [vmem:[#allocation49_spill] sm:$0xff]  ;;  %v5921_v43 = vperm.slane %v4189_v8, 2  ;;  %v1989_v18 = vsel %vm454_vm10, %v1735_v49, 0  ;;  %v5925_v8 = vld [vmem:[#allocation14_spill] sm:$0xff]  ;;  %v1527_v49 = vsel %vm166_vm2, %v5928_v21, %v4862_v7  ;;  %v5931_v7 = vld [vmem:[#allocation3_spill] sm:$0xff] }
 0x279   :  { %2293 = vmatmul.f32.vlgmr.msrb.gmra.mxu1 %v4523_v46  ;;  %v5014_v25 = vpop.permute.xlu1 %1393  ;;  %v5019_v15 = vsel %vm195_vm0, %v1812_v45, %v5918_v60  ;;  %2534 = vmatpush.msra.mxu2 %v5919_v38  ;;  %v5924_v38 = vand.u32 4294901760, %v4645_v16  ;;  %v5933_v21 = vld [vmem:[#allocation25_spill] sm:$0xff] }
 0x27a   :  { %2480 = vmatpush.msra.mxu1 %v4505_v30  ;;  %v1400_v63 = vsel %vm50_vm4, %v5014_v25, %v5920_v13  ;;  %v1693_v45 = vmul.f32 %v5921_v43, %v1670_v33  ;;  %2586 = vmatpush.msra.mxu3 %v4605_v22  ;;  %v5922_v30 = vld [vmem:[#allocation39_spill] sm:$0xff]  ;;  %v5043_v13 = vsel %vm468_vm13, %v1756_v47, %v1776_v14  ;;  %v1640_v14 = vperm.slane %v4196_v5, 3 }
 0x27b   :  { %2447 = vmatpush.msra.mxu0 %v5922_v30  ;;  %v1424_v60 = vmul.f32 %v5923_v44, %v1400_v63  ;;  %2538 = vmatpush.msra.mxu2 %v5924_v38  ;;  %v1711_v43 = vsel %vm338_vm15, %v5925_v8, %v4783_v23  ;;  %v5927_v47 = vand.u32 4294901760, %v5922_v30  ;;  %v1831_v33 = vrot.slane %v5031_v61, 4  ;;  %v5930_v44 = vld [vmem:[#allocation35_spill] sm:$0xff] }
 0x27c   :  { %2482 = vmatpush.msra.mxu1 %v4417_v35  ;;  %2588 = vmatpush.msra.mxu3 %v5877_v10  ;;  %v5926_v35 = vrot.slane %v4803_v57, 7  ;;  %v1921_v63 = vrot.slane %v1693_v45, 1  ;;  %v5929_v57 = vld [vmem:[#allocation4_spill] sm:$0xff]  ;;  %v5072_v30 = vand.u32 4294901760, %v1989_v18  ;;  %v1731_v38 = vmul.f32 %v1723_v28, %v1711_v43 }
 0x27d   :  { %2450 = vmatpush.msra.mxu0 %v4635_v26  ;;  %2542 = vmatpush.msra.mxu2 %v5927_v47  ;;  %v5932_v45 = vperm.slane %v4948_v51, 3  ;;  %v1838_v47 = vsel %vm195_vm0, %v1831_v33, %v1837_v37  ;;  %v1528_v28 = vsel %vm166_vm2, %v5933_v21, %v4677_v2  ;;  %v5100_v43 = vld [vmem:[%s5667_s1 + $0x20] ss:$8 sm:$0xf] }
 0x27e   :  { %v5055_v16 = vsel %vm454_vm10, %v1424_v60, %v5926_v35  ;;  %2484 = vmatpush.msra.mxu1 %v4545_v9  ;;  %2590 = vmatpush.msra.mxu3 %v5881_v41  ;;  %v1633_v9 = vsel %vm260_vm8, %v5930_v44, %v5929_v57  ;;  %v1537_v60 = vperm.slane %v5891_v11, 2  ;;  %v1598_v35 = vperm.slane %v4201_v34, 3  ;;  %v5936_v2 = vld [vmem:[#allocation34_spill] sm:$0xff]  ;;  %v5937_v44 = vld [vmem:[#allocation13_spill] sm:$0xff] }
 0x27f   :  { %2261 = vmatmul.f32.gmra.mxu0 %v4681_v31  ;;  %v5080_v8 = vmul.f32 %v5932_v45, %v5931_v7  ;;  %v5934_v11 = vand.u32 4294901760, %v4635_v26  ;;  %v1724_v37 = vperm.slane %v5100_v43, 3  ;;  %v1486_v26 = vsel %vm127_vm3, %v5936_v2, %v4962_v12  ;;  %2341 = vmatmul.f32.gmra.mxu2 %v4856_v3  ;;  %v5943_v2 = vld [vmem:[#allocation9_spill] sm:$0xff] }
 0x280   :  { %2453 = vmatpush.msra.mxu0 %v4766_v17  ;;  %2486 = vmatpush.msra.mxu1 %v4615_v52  ;;  %v5935_v52 = vld [vmem:[#allocation5_spill] sm:$0xff]  ;;  %v5103_v57 = vmul.f32 %v1537_v60, %v1527_v49  ;;  %v1718_v7 = vsel %vm338_vm15, %v5909_v29, %v5937_v44  ;;  %v1495_v49 = vperm.slane %v5892_v4, 2  ;;  %v5938_v45 = vrot.slane %v4772_v62, 1 }
 0x281   :  { %2546 = vmatpush.msra.mxu2 %v5934_v11  ;;  %2592 = vmatpush.msra.mxu3 %v4724_v1  ;;  %v1591_v51 = vsel %vm221_vm5, %v4521_v50, %v5935_v52  ;;  %v5113_v50 = vmul.f32 %v1640_v14, %v1633_v9  ;;  %v5939_v12 = vand.u32 4294901760, %v4766_v17  ;;  %v5940_v9 = vld [vmem:[#allocation10_spill] sm:$0xff]  ;;  %v1549_v29 = vmul.f32 %v1537_v60, %v1528_v28 }
 0x282   :  { %2456 = vmatpush.msra.mxu0 %v4813_v42  ;;  %2488 = vmatpush.msra.mxu1 %v4605_v22  ;;  %v1922_v21 = vsel %vm463_vm12, %v5938_v45, %v1921_v63  ;;  %v5127_v22 = vsub.f32 %v1989_v18, %v5072_v30  ;;  %v1485_v11 = vsel %vm127_vm3, %v5940_v9, %v4675_v53  ;;  %v5133_v52 = vand.u32 4294901760, %v1731_v38  ;;  %v3270_v4 = vld [vmem:[%s5667_s1 + $0x7] ss:$8 sm:$0xf] }
 0x283   :  { %2550 = vmatpush.msra.mxu2 %v5939_v12  ;;  %2594 = vmatpush.msra.mxu3 %v4768_v59  ;;  %v1839_v62 = vrot.slane %v5080_v8, 4  ;;  %v5140_v17 = vmul.f32 %v1598_v35, %v1591_v51  ;;  %v1682_v18 = vperm.slane %v3270_v4, 3  ;;  %v1507_v63 = vmul.f32 %v1495_v49, %v1486_v26  ;;  %v5944_v26 = vld [vmem:[#allocation8_spill] sm:$0xff] }
 0x284   :  { %2459 = vmatpush.msra.mxu0 %v4827_v40  ;;  %2490 = vmatpush.msra.mxu1 %v5877_v10  ;;  %v5941_v53 = vand.u32 4294901760, %v4813_v42  ;;  %v5942_v60 = vrot.slane %v4843_v39, 3  ;;  %v1634_v51 = vsel %vm260_vm8, %v4760_v19, %v5943_v2  ;;  %v1803_v44 = vrot.slane %v5103_v57, 5  ;;  %v5947_v2 = vld [vmem:[#allocation6_spill] sm:$0xff] }
 0x285   :  { %2596 = vmatpush.msra.mxu3 %v4785_v58  ;;  %v5160_v10 = vand.u32 4294901760, %v1922_v21  ;;  %v1888_v42 = vrot.slane %v5113_v50, 2  ;;  %v1675_v39 = vsel %vm299_vm9, %v4582_v27, %v5944_v26  ;;  %v5169_v45 = vmul.f32 %v1495_v49, %v1485_v11  ;;  %2297 = vmatmul.f32.gmra.mxu1 %v4681_v31  ;;  %v5950_v26 = vld [vmem:[#allocation57_spill] sm:$0xff] }
 0x286   :  { %2554 = vmatpush.msra.mxu2 %v5941_v53  ;;  %v5151_v28 = vsel %vm473_vm14, %v1838_v47, %v5942_v60  ;;  %2462 = vmatpush.msra.mxu0 %v4846_v32  ;;  %v1736_v47 = vmul.f32 %v1724_v37, %v1718_v7  ;;  %v1809_v19 = vrot.slane %v1549_v29, 5  ;;  %v5945_v12 = vand.u32 4294901760, %v4827_v40  ;;  %v5946_v29 = vld [vmem:[#allocation7_spill] sm:$0xff] }
 0x287   :  { %2421 = vmatmul.f32.gmra.mxu3 %v4681_v31  ;;  %2492 = vmatpush.msra.mxu1 %v5881_v41  ;;  %v5177_v9 = vsub.f32 %v1731_v38, %v5133_v52  ;;  %v5180_v27 = vand.u32 4294901760, %v4839_v48  ;;  %v2659_v7 = vand.u32 4294901760, %v5127_v22  ;;  %v1860_v49 = vrot.slane %v5140_v17, 3 }
 0x288   :  { %2558 = vmatpush.msra.mxu2 %v5945_v12  ;;  %2598 = vmatpush.msra.mxu3 %v4809_v24  ;;  %v1652_v11 = vmul.f32 %v1640_v14, %v1634_v51  ;;  %v1781_v41 = vrot.slane %v1507_v63, 6  ;;  %v5189_v40 = vand.u32 4294901760, %v5151_v28  ;;  %v1810_v38 = vsel %vm444_vm7, %v1803_v44, %v1809_v19 }
 0x289   :  { %2465 = vmatmul.f32.vlgmr.msra.gmra.mxu0 %v4554_v20  ;;  %v1676_v4 = vsel %vm299_vm9, %v4906_v36, %v5946_v29  ;;  %v5201_v5 = vsub.f32 %v1922_v21, %v5160_v10  ;;  %v5204_v14 = vand.u32 4294901760, %v4893_v6  ;;  %v5206_v63 = vmul.f32 %v1682_v18, %v1675_v39  ;;  %2494 = vmatpush.msra.mxu1 %v4724_v1  ;;  %v5949_v21 = vld [vmem:[#allocation12_spill] sm:$0xff] }
 0x28a   :  { %2614 = vmatpush.msrb.mxu0 %v5072_v30  ;;  %2787 = vmatpush.msrb.mxu3 %v5072_v30  ;;  %v1992_v53 = vsel %vm454_vm10, %v1736_v47, 0  ;;  %v1775_v60 = vrot.slane %v5169_v45, 6  ;;  %v1717_v36 = vsel %vm338_vm15, %v4783_v23, %v5947_v2  ;;  %v5948_v51 = vand.u32 4294901760, %v4846_v32 }
 0x28b   :  { %v1592_v39 = vsel %vm221_vm5, %v5950_v26, %v5949_v21  ;;  %v2660_v47 = vsub.f32 %v5127_v22, %v2659_v7  ;;  %v5228_v23 = vsub.f32 %v4839_v48, %v5180_v27  ;;  %v5769_v1 = vand.u32 4294901760, %v5177_v9  ;;  %2496 = vmatpush.msra.mxu1 %v4768_v59  ;;  %v5951_v48 = vld [vmem:[#allocation40_spill] sm:$0xff]  ;;  %v5952_v26 = vld [vmem:[#allocation47_spill] sm:$0xff] }
 0x28c   :  { %2562 = vmatpush.msra.mxu2 %v5948_v51  ;;  %2616 = vmatpush.msrb.mxu0 %v5133_v52  ;;  %v1895_v32 = vrot.slane %v1652_v11, 2  ;;  %v1694_v45 = vmul.f32 %v1682_v18, %v1676_v4  ;;  %v1782_v19 = vsel %vm468_vm13, %v1775_v60, %v1781_v41  ;;  %v1947_v12 = vsel %vm195_vm0, %v1810_v38, %v1831_v33  ;;  %v5272_v41 = vpop.permute.xlu2 %1391 }
 0x28d   :  { %2789 = vmatpush.msrb.mxu3 %v5133_v52  ;;  %v1732_v29 = vmul.f32 %v1724_v37, %v1717_v36  ;;  %v1402_v2 = vsel %vm50_vm4, %v5951_v48, %v5014_v25  ;;  %2564 = vmatmul.f32.vlgmr.msra.gmra.mxu2 %v4523_v46  ;;  %v5247_v18 = vsub.f32 %v4893_v6, %v5204_v14  ;;  %v5768_v59 = vand.u32 4294901760, %v5201_v5  ;;  %v1964_v6 = vld [vmem:[%s5671_s5 + $0x8] sm:$0x1] }
 0x28e   :  { %2739 = vmatpush.msrb.mxu2 %v5127_v22  ;;  %2618 = vmatpush.msrb.mxu0 %v5160_v10  ;;  %v1916_v61 = vrot.slane %v5206_v63, 1  ;;  %v5251_v33 = vand.u32 4294901760, %v1992_v53  ;;  %v1610_v43 = vmul.f32 %v1598_v35, %v1592_v39  ;;  %v1411_v37 = vperm.slane %v4471_v0, 2 }
 0x28f   :  { %2791 = vmatpush.msrb.mxu3 %v5160_v10  ;;  %2498 = vmatpush.msra.mxu1 %v4785_v58  ;;  %v2666_v25 = vsub.f32 %v5177_v9, %v5769_v1  ;;  %v5266_v34 = vand.u32 4294901760, %v1947_v12  ;;  %v1943_v35 = vsel %vm444_vm7, %v1782_v19, %v1803_v44  ;;  %v5767_v11 = vand.u32 4294901760, %v5228_v23  ;;  %v5961_v1 = vld [vmem:[#allocation27_spill] sm:$0xff] }
 0x290   :  { %2742 = vmatpush.msrb.mxu2 %v5177_v9  ;;  %2600 = vmatmul.f32.vlgmr.msra.gmra.mxu3 %v4523_v46  ;;  %v1923_v58 = vrot.slane %v1694_v45, 1  ;;  %v1423_v38 = vmul.f32 %v1411_v37, %v1402_v2  ;;  %v2661_v4 = vand.u32 4294901760, %v2660_v47  ;;  %v5278_v63 = vsub.f32 %v5151_v28, %v5189_v40  ;;  %v5953_v47 = vld [vmem:[#allocation26_spill] sm:$0xff] }
 0x291   :  { %2620 = vmatpush.msrb.mxu0 %v5180_v27  ;;  %v1896_v57 = vsel %vm449_vm11, %v1888_v42, %v1895_v32  ;;  %v5283_v44 = vand.u32 4294901760, %v1732_v29  ;;  %2793 = vmatpush.msrb.mxu3 %v5180_v27  ;;  %v2672_v36 = vsub.f32 %v5201_v5, %v5768_v59  ;;  %v5765_v51 = vand.u32 4294901760, %v5247_v18 }
 0x292   :  { %2745 = vmatpush.msrb.mxu2 %v5201_v5  ;;  %2500 = vmatpush.msra.mxu1 %v4809_v24  ;;  %v5292_v21 = vsub.f32 %v1992_v53, %v5251_v33  ;;  %v1867_v28 = vrot.slane %v1610_v43, 3  ;;  %v5295_v39 = vand.u32 4294901760, %v1943_v35  ;;  %v1939_v32 = vsel %vm468_vm13, %v5953_v47, %v1775_v60  ;;  %v5954_v24 = vld [vmem:[#allocation53_spill] sm:$0xff]  ;;  %v5955_v43 = vld [vmem:[#allocation56_spill] sm:$0xff] }
 0x293   :  { %1972 = vperm.xlu1 %3265, %v1964_v6   ;;  %2504 = vmatmul.f32.vlgmr.msra.gmra.mxu1 %v5952_v26  ;;  %v1401_v45 = vsel %vm50_vm4, %v5954_v24, %v5272_v41  ;;  %v2667_v19 = vand.u32 4294901760, %v2666_v25  ;;  %v2678_v53 = vsub.f32 %v5228_v23, %v5767_v11  ;;  %v5308_v48 = vsub.f32 %v1947_v12, %v5266_v34 }
 0x294   :  { %2622 = vmatpush.msrb.mxu0 %v5204_v14  ;;  %2662 = vmatpush.msrb.mxu1 %v2661_v4  ;;  %v1924_v2 = vsel %vm463_vm12, %v1916_v61, %v1923_v58  ;;  %v5956_v60 = vrot.slane %v5955_v43, 7  ;;  %v5764_v4 = vand.u32 4294901760, %v5278_v63  ;;  %v1960_v25 = vsel %vm463_vm12, %v1896_v57, %v1916_v61 }
 0x295   :  { %2748 = vmatpush.msrb.mxu2 %v5228_v23  ;;  %2795 = vmatpush.msrb.mxu3 %v5204_v14  ;;  %v5319_v47 = vsub.f32 %v1732_v29, %v5283_v44  ;;  %v2673_v12 = vand.u32 4294901760, %v2672_v36  ;;  %v5322_v58 = vand.u32 4294901760, %v1939_v32  ;;  %v1868_v24 = vsel %vm473_vm14, %v1860_v49, %v1867_v28 }
 0x296   :  { %v1935_v6 = vsel %vm454_vm10, %v1423_v38, %v5956_v60  ;;  %2624 = vmatpush.msrb.mxu0 %v5189_v40  ;;  %2668 = vmatpush.msrb.mxu1 %v2667_v19  ;;  %v2684_v38 = vsub.f32 %v5247_v18, %v5765_v51  ;;  %v1419_v43 = vmul.f32 %v1411_v37, %v1401_v45  ;;  %v5335_v61 = vand.u32 4294901760, %v1924_v2 }
 0x297   :  { %2751 = vmatpush.msrb.mxu2 %v5247_v18  ;;  %2797 = vmatpush.msrb.mxu3 %v5189_v40  ;;  %v5333_v29 = vsub.f32 %v1943_v35, %v5295_v39  ;;  %v2679_v57 = vand.u32 4294901760, %v2678_v53  ;;  %v5338_v36 = vand.u32 4294901760, %v1935_v6  ;;  %v5762_v19 = vand.u32 4294901760, %v5308_v48  ;;  %v5958_v53 = vld [vmem:[#allocation54_spill] sm:$0xff] }
 0x298   :  { %2626 = vmatpush.msrb.mxu0 %v5266_v34  ;;  %2674 = vmatpush.msrb.mxu1 %v2673_v12  ;;  %v5957_v37 = vrot.slane %v4976_v54, 4  ;;  %v2690_v35 = vsub.f32 %v5278_v63, %v5764_v4  ;;  %v5761_v45 = vand.u32 4294901760, %v5292_v21  ;;  %v2685_v60 = vand.u32 4294901760, %v2684_v38  ;;  %v5960_v4 = vld [vmem:[#allocation15_spill] sm:$0xff] }
 0x299   :  { %2754 = vmatpush.msrb.mxu2 %v5278_v63  ;;  %2799 = vmatpush.msrb.mxu3 %v5266_v34  ;;  %v5354_v8 = vsub.f32 %v1939_v32, %v5322_v58  ;;  %v5356_v54 = vand.u32 4294901760, %v1960_v25  ;;  %v5763_v38 = vand.u32 4294901760, %v5333_v29  ;;  %v5370_v32 = vsub.f32 %v1924_v2, %v5335_v61 }
 0x29a   :  { %v1840_v28 = vsel %vm195_vm0, %v5957_v37, %v1839_v62  ;;  %2470 = vmatmul.f32.gmra.mxu0 %v5958_v53  ;;  %2680 = vmatpush.msrb.mxu1 %v2679_v57  ;;  %v1956_v62 = vsel %vm449_vm11, %v1868_v24, %v1888_v42  ;;  %v5364_v37 = vand.u32 4294901760, %v1419_v43  ;;  %v2696_v50 = vsub.f32 %v5308_v48, %v5762_v19 }
 0x29b   :  { %v1952_v12 = vsel %vm473_vm14, %v1840_v28, %v1860_v49  ;;  %2628 = vmatpush.msrb.mxu0 %v5295_v39  ;;  %2757 = vmatpush.msrb.mxu2 %v5308_v48  ;;  %v5377_v17 = vsub.f32 %v1935_v6, %v5338_v36  ;;  %v5766_v42 = vand.u32 4294901760, %v5319_v47  ;;  %v2691_v49 = vand.u32 4294901760, %v2690_v35 }
 0x29c   :  { %2801 = vmatpush.msrb.mxu3 %v5295_v39  ;;  %2686 = vmatpush.msrb.mxu1 %v2685_v60  ;;  %v5382_v24 = vand.u32 4294901760, %v1956_v62  ;;  %v2967_v2 = vsub.f32 %v5292_v21, %v5761_v45  ;;  %v5770_v6 = vand.u32 4294901760, %v5354_v8  ;;  %v5391_v57 = vsub.f32 %v1960_v25, %v5356_v54 }
 0x29d   :  { %2630 = vmatpush.msrb.mxu0 %v5322_v58  ;;  %2760 = vmatpush.msrb.mxu2 %v5333_v29  ;;  %v5393_v28 = vand.u32 4294901760, %v1952_v12  ;;  %v2702_v35 = vsub.f32 %v5333_v29, %v5763_v38  ;;  %v5400_v60 = vsub.f32 %v1419_v43, %v5364_v37  ;;  %v2697_v45 = vand.u32 4294901760, %v2696_v50 }
 0x29e   :  { %2803 = vmatpush.msrb.mxu3 %v5322_v58  ;;  %2568 = vmatmul.f32.gmra.mxu2 %v4681_v31  ;;  %v2973_v25 = vsub.f32 %v5319_v47, %v5766_v42  ;;  %v5771_v19 = vand.u32 4294901760, %v5370_v32  ;;  %v5412_v43 = vsub.f32 %v1956_v62, %v5382_v24  ;;  %v5415_v38 = vand.u32 4294901760, %v5019_v15 }
 0x29f   :  { %2632 = vmatpush.msrb.mxu0 %v5338_v36  ;;  %2692 = vmatpush.msrb.mxu1 %v2691_v49  ;;  %v5773_v49 = vand.u32 4294901760, %v5377_v17  ;;  %v5959_v50 = vrot.slane %v4939_v56, 5  ;;  %v2968_v42 = vand.u32 4294901760, %v2967_v2  ;;  %v2708_v11 = vsub.f32 %v5354_v8, %v5770_v6 }
 0x2a0   :  { %2763 = vmatpush.msrb.mxu2 %v5354_v8  ;;  %2805 = vmatpush.msrb.mxu3 %v5338_v36  ;;  %v5772_v59 = vand.u32 4294901760, %v5391_v57  ;;  %v5427_v62 = vsub.f32 %v1952_v12, %v5393_v28  ;;  %v1399_v56 = vsel %vm50_vm4, %v5272_v41, %v5961_v1  ;;  %v2719_v2 = vand.u32 4294901760, %v5400_v60 }
 0x2a1   :  { %2604 = vmatmul.f32.gmra.mxu3 %v4681_v31  ;;  %2634 = vmatpush.msrb.mxu0 %v5364_v37  ;;  %v1944_v51 = vsel %vm444_vm7, %v5960_v4, %v5959_v50  ;;  %v5962_v4 = vld [vmem:[#allocation55_spill] sm:$0xff]  ;;  %v5963_v50 = vld [vmem:[#allocation52_spill] sm:$0xff]  ;;  %v2974_v6 = vand.u32 4294901760, %v2973_v25  ;;  %v2979_v12 = vsub.f32 %v5370_v32, %v5771_v19  ;;  %v2714_v55 = vsub.f32 %v5377_v17, %v5773_v49 }
 0x2a2   :  { %2698 = vmatpush.msrb.mxu1 %v2697_v45  ;;  %2766 = vmatpush.msrb.mxu2 %v5377_v17  ;;  %v2703_v45 = vand.u32 4294901760, %v2702_v35  ;;  %v5443_v1 = vand.u32 4294901760, %v1944_v51  ;;  %v2990_v41 = vand.u32 4294901760, %v5412_v43  ;;  %v2709_v35 = vand.u32 4294901760, %v2708_v11 }
 0x2a3   :  { %2807 = vmatpush.msrb.mxu3 %v5364_v37  ;;  %2510 = vmatmul.f32.gmra.mxu1 %v5962_v4  ;;  %v2985_v25 = vsub.f32 %v5391_v57, %v5772_v59  ;;  %v5457_v19 = vand.u32 4294901760, %v5043_v13  ;;  %v5964_v22 = vperm.slane %v4471_v0, 3  ;;  %v2996_v11 = vand.u32 4294901760, %v5427_v62 }
 0x2a4   :  { %2640 = vmatmul.f32.vlgmr.msrb.gmra.mxu0 %v5963_v50  ;;  %2704 = vmatpush.msrb.mxu1 %v2703_v45  ;;  %v5965_v45 = vand.u32 4294901760, %v5177_v9  ;;  %v2715_v59 = vand.u32 4294901760, %v2714_v55  ;;  %v5470_v49 = vsub.f32 %v1944_v51, %v5443_v1  ;;  %v5473_v0 = vand.u32 4294901760, %v5055_v16 }
 0x2a5   :  { %2969 = vmatpush.msra.mxu3 %v2968_v42  ;;  %2829 = vmatpush.msra.mxu0 %v2659_v7  ;;  %v5450_v42 = vsub.f32 %v5019_v15, %v5415_v38  ;;  %v1420_v7 = vmul.f32 %v5964_v22, %v1399_v56  ;;  %v2720_v15 = vsub.f32 %v5400_v60, %v2719_v2  ;;  %v5966_v9 = vand.u32 4294901760, %v5201_v5 }
 0x2a6   :  { %2769 = vmatpush.msrb.mxu2 %v5400_v60  ;;  %2710 = vmatpush.msrb.mxu1 %v2709_v35  ;;  %v2991_v56 = vsub.f32 %v5412_v43, %v2990_v41  ;;  %v5484_v51 = vsub.f32 %v5043_v13, %v5457_v19  ;;  %v5967_v5 = vand.u32 4294901760, %v5228_v23  ;;  %v5498_v13 = vsub.f32 %v5055_v16, %v5473_v0 }
 0x2a7   :  { %2975 = vmatpush.msra.mxu3 %v2974_v6  ;;  %2833 = vmatpush.msra.mxu0 %v5965_v45  ;;  %v2980_v6 = vand.u32 4294901760, %v2979_v12  ;;  %v3002_v35 = vand.u32 4294901760, %v5450_v42  ;;  %v2986_v12 = vand.u32 4294901760, %v2985_v25  ;;  %v5486_v55 = vand.u32 4294901760, %v1420_v7 }
 0x2a8   :  { %2921 = vmatpush.msra.mxu2 %v5251_v33  ;;  %2716 = vmatpush.msrb.mxu1 %v2715_v59  ;;  %v2721_v22 = vand.u32 4294901760, %v2720_v15  ;;  %v2997_v45 = vsub.f32 %v5427_v62, %v2996_v11  ;;  %v3008_v59 = vand.u32 4294901760, %v5470_v49  ;;  %v5968_v25 = vand.u32 4294901760, %v5247_v18 }
 0x2a9   :  { %2772 = vmatmul.f32.vlgmr.msrb.gmra.mxu2 %v4554_v20  ;;  %2837 = vmatpush.msra.mxu0 %v5966_v9  ;;  %v2992_v23 = vand.u32 4294901760, %v2991_v56  ;;  %v3003_v15 = vsub.f32 %v5450_v42, %v3002_v35  ;;  %v5509_v9 = vsub.f32 %v1420_v7, %v5486_v55  ;;  %v5969_v18 = vand.u32 4294901760, %v5278_v63 }
 0x2aa   :  { %2923 = vmatpush.msra.mxu2 %v5283_v44  ;;  %2981 = vmatpush.msra.mxu3 %v2980_v6  ;;  %v3014_v6 = vand.u32 4294901760, %v5484_v51  ;;  %v2998_v16 = vand.u32 4294901760, %v2997_v45  ;;  %v3009_v56 = vsub.f32 %v5470_v49, %v3008_v59  ;;  %v3020_v7 = vand.u32 4294901760, %v5498_v13 }
 0x2ab   :  { %2811 = vmatmul.f32.vlgmr.msrb.gmra.mxu3 %v5952_v26  ;;  %2841 = vmatpush.msra.mxu0 %v5967_v5  ;;  %v5970_v5 = vand.u32 4294901760, %v5308_v48  ;;  %v3026_v63 = vand.u32 4294901760, %v5509_v9  ;;  %v5972_v45 = vand.u32 4294901760, %v5354_v8 }
 0x2ac   :  { %2925 = vmatpush.msra.mxu2 %v5335_v61  ;;  %2987 = vmatpush.msra.mxu3 %v2986_v12  ;;  %v3004_v12 = vand.u32 4294901760, %v3003_v15  ;;  %v3021_v48 = vsub.f32 %v5498_v13, %v3020_v7 }
 0x2ad   :  { %2722 = vmatpush.msrb.mxu1 %v2721_v22  ;;  %2845 = vmatpush.msra.mxu0 %v5968_v25  ;;  %v5971_v22 = vand.u32 4294901760, %v5333_v29  ;;  %v3027_v29 = vsub.f32 %v5509_v9, %v3026_v63 }
 0x2ae   :  { %2724 = vmatmul.f32.vlgmr.msrb.gmra.mxu1 %v4523_v46  ;;  %2927 = vmatpush.msra.mxu2 %v5356_v54  ;;  %v3022_v25 = vand.u32 4294901760, %v3021_v48 }
 0x2af   :  { %2885 = vmatpush.msra.mxu1 %v5072_v30  ;;  %2993 = vmatpush.msra.mxu3 %v2992_v23  ;;  %v3015_v30 = vsub.f32 %v5484_v51, %v3014_v6 }
 0x2b0   :  { %2849 = vmatpush.msra.mxu0 %v5969_v18  ;;  %2929 = vmatpush.msra.mxu2 %v5382_v24 }
 0x2b1   :  { %2887 = vmatpush.msra.mxu1 %v5133_v52  ;;  %2999 = vmatpush.msra.mxu3 %v2998_v16  ;;  %v3010_v52 = vand.u32 4294901760, %v3009_v56 }
 0x2b2   :  { %2853 = vmatpush.msra.mxu0 %v5970_v5  ;;  %2931 = vmatpush.msra.mxu2 %v5393_v28 }
 0x2b3   :  { %2889 = vmatpush.msra.mxu1 %v5160_v10  ;;  %3005 = vmatpush.msra.mxu3 %v3004_v12  ;;  %v3016_v10 = vand.u32 4294901760, %v3015_v30 }
 0x2b4   :  { %2648 = vmatmul.f32.gmra.mxu0 %v4856_v3  ;;  %2933 = vmatpush.msra.mxu2 %v5415_v38 }
 0x2b5   :  { %2857 = vmatpush.msra.mxu0 %v5971_v22  ;;  %2891 = vmatpush.msra.mxu1 %v5180_v27  ;;  %v5973_v27 = vand.u32 4294901760, %v5377_v17 }
 0x2b6   :  { %3011 = vmatpush.msra.mxu3 %v3010_v52  ;;  %2777 = vmatmul.f32.gmra.mxu2 %v5958_v53 }
 0x2b7   :  { %2861 = vmatpush.msra.mxu0 %v5972_v45  ;;  %2893 = vmatpush.msra.mxu1 %v5204_v14  ;;  %v3028_v14 = vand.u32 4294901760, %v3027_v29 }
 0x2b8   :  { %2935 = vmatpush.msra.mxu2 %v5443_v1  ;;  %3017 = vmatpush.msra.mxu3 %v3016_v10 }
 0x2b9   :  { %2817 = vmatmul.f32.gmra.mxu3 %v5962_v4  ;;  %2865 = vmatpush.msra.mxu0 %v5973_v27 }
 0x2ba   :  { %2895 = vmatpush.msra.mxu1 %v5189_v40  ;;  %2937 = vmatpush.msra.mxu2 %v5457_v19  ;;  %v5974_v40 = vand.u32 4294901760, %v5292_v21 }
 0x2bb   :  { %3023 = vmatpush.msra.mxu3 %v3022_v25  ;;  %2869 = vmatpush.msra.mxu0 %v2719_v2 }
 0x2bc   :  { %2897 = vmatpush.msra.mxu1 %v5266_v34  ;;  %2939 = vmatpush.msra.mxu2 %v5473_v0  ;;  %v5975_v34 = vand.u32 4294901760, %v5319_v47 }
 0x2bd   :  { %3029 = vmatpush.msra.mxu3 %v3028_v14  ;;  %2728 = vmatmul.f32.gmra.mxu1 %v4681_v31 }
 0x2be   :  { %2871 = vmatmul.f32.vlgmr.msra.gmra.mxu0 %v4523_v46  ;;  %2899 = vmatpush.msra.mxu1 %v5295_v39  ;;  %v5976_v39 = vand.u32 4294901760, %v5370_v32 }
 0x2bf   :  { %3192 = vmatpush.msrb.mxu3 %v5251_v33  ;;  %3046 = vmatpush.msrb.mxu0 %v5292_v21  ;;  %v5977_v21 = vand.u32 4294901760, %v5391_v57 }
 0x2c0   :  { %2941 = vmatpush.msra.mxu2 %v5486_v55  ;;  %2901 = vmatpush.msra.mxu1 %v5322_v58 }
 0x2c1   :  { %3194 = vmatpush.msrb.mxu3 %v5283_v44  ;;  %2947 = vmatmul.f32.vlgmr.msra.gmra.mxu2 %v5963_v50 }
 0x2c2   :  { %3049 = vmatpush.msrb.mxu0 %v5319_v47  ;;  %3136 = vmatpush.msrb.mxu2 %v5974_v40 }
 0x2c3   :  { %3031 = vmatmul.f32.vlgmr.msra.gmra.mxu3 %v4523_v46  ;;  %2903 = vmatpush.msra.mxu1 %v5338_v36 }
 0x2c4   :  { %3052 = vmatpush.msrb.mxu0 %v5370_v32  ;;  %3140 = vmatpush.msrb.mxu2 %v5975_v34 }
 0x2c5   :  { %3196 = vmatpush.msrb.mxu3 %v5335_v61  ;;  %2905 = vmatpush.msra.mxu1 %v5364_v37 }
 0x2c6   :  { %3055 = vmatpush.msrb.mxu0 %v5391_v57  ;;  %3144 = vmatpush.msrb.mxu2 %v5976_v39 }
 0x2c7   :  { %3198 = vmatpush.msrb.mxu3 %v5356_v54  ;;  %2907 = vmatmul.f32.vlgmr.msra.gmra.mxu1 %v4523_v46 }
 0x2c8   :  { %3058 = vmatpush.msrb.mxu0 %v5412_v43  ;;  %3148 = vmatpush.msrb.mxu2 %v5977_v21 }
 0x2c9   :  { %3094 = vmatpush.msrb.mxu1 %v5251_v33  ;;  %3200 = vmatpush.msrb.mxu3 %v5382_v24  ;;  %v5630_v33 = vpop.permute.xlu0 %1967 }
 0x2ca   :  { %3061 = vmatpush.msrb.mxu0 %v5427_v62  ;;  %3152 = vmatpush.msrb.mxu2 %v2990_v41 }
 0x2cb   :  { %3096 = vmatpush.msrb.mxu1 %v5283_v44  ;;  %3202 = vmatpush.msrb.mxu3 %v5393_v28 }
 0x2cc   :  { %2875 = vmatmul.f32.gmra.mxu0 %v4681_v31  ;;  %3156 = vmatpush.msrb.mxu2 %v2996_v11 }
 0x2cd   :  { %3064 = vmatpush.msrb.mxu0 %v5450_v42  ;;  %3098 = vmatpush.msrb.mxu1 %v5335_v61 }
 0x2ce   :  { %3204 = vmatpush.msrb.mxu3 %v5415_v38  ;;  %3160 = vmatpush.msrb.mxu2 %v3002_v35 }
 0x2cf   :  { %3067 = vmatpush.msrb.mxu0 %v5470_v49  ;;  %3100 = vmatpush.msrb.mxu1 %v5356_v54 }
 0x2d0   :  { %3206 = vmatpush.msrb.mxu3 %v5443_v1  ;;  %2911 = vmatmul.f32.gmra.mxu1 %v4681_v31 }
 0x2d1   :  { %3070 = vmatpush.msrb.mxu0 %v5484_v51  ;;  %3102 = vmatpush.msrb.mxu1 %v5382_v24 }
 0x2d2   :  { %3164 = vmatpush.msrb.mxu2 %v3008_v59  ;;  %3208 = vmatpush.msrb.mxu3 %v5457_v19 }
 0x2d3   :  { %2955 = vmatmul.f32.gmra.mxu2 %v4856_v3  ;;  %3073 = vmatpush.msrb.mxu0 %v5498_v13 }
 0x2d4   :  { %3104 = vmatpush.msrb.mxu1 %v5393_v28  ;;  %3168 = vmatpush.msrb.mxu2 %v3014_v6 }
 0x2d5   :  { %3210 = vmatpush.msrb.mxu3 %v5473_v0  ;;  %3076 = vmatpush.msrb.mxu0 %v5509_v9 }
 0x2d6   :  { %3035 = vmatmul.f32.gmra.mxu3 %v4681_v31  ;;  %3106 = vmatpush.msrb.mxu1 %v5415_v38 }
 0x2d7   :  { %3172 = vmatpush.msrb.mxu2 %v3020_v7  ;;  %3212 = vmatpush.msrb.mxu3 %v5486_v55 }
 0x2d8   :  { %3079 = vmatmul.f32.vlgmr.msrb.gmra.mxu0 %v4554_v20  ;;  %3108 = vmatpush.msrb.mxu1 %v5443_v1  ;;  %v2027_v20 = vpop.f32.mrf.mxu0 }
 0x2d9   :  { %3176 = vmatpush.msrb.mxu2 %v3026_v63  ;;  %v2028_v47 = vadd.f32 %v2027_v20, %v5630_v33  ;;  %v2159_v58 = vpop.f32.mrf.mxu2 }
 0x2da   :  { %3110 = vmatpush.msrb.mxu1 %v5457_v19  ;;  %v2111_v3 = vpop.f32.mrf.mxu1 }
 0x2db   :  { %3178 = vmatmul.f32.vlgmr.msrb.gmra.mxu2 %v4523_v46 }
 0x2dc   :  { %3112 = vmatpush.msrb.mxu1 %v5473_v0 }
 0x2de   :  { %3214 = vmatmul.f32.vlgmr.msrb.gmra.mxu3 %v4523_v46  ;;  %3114 = vmatpush.msrb.mxu1 %v5486_v55  ;;  %v2112_v46 = vadd.f32 %v2111_v3, %v2028_v47 }
 0x2df   :  { %3118 = vmatmul.f32.vlgmr.msrb.gmra.mxu1 %v5952_v26  ;;  %v2198_v26 = vpop.f32.mrf.mxu3 }
 0x2e0   :  { %3084 = vmatmul.f32.gmra.mxu0 %v5958_v53  ;;  %v2160_v36 = vadd.f32 %v2159_v58, %v2112_v46 }
 0x2e2   :  { %v2199_v53 = vadd.f32 %v2198_v26, %v2160_v36 }
 0x2e3   :  { %3182 = vmatmul.f32.gmra.mxu2 %v4681_v31  ;;  %v2035_v44 = vpop.f32.mrf.mxu0  ;;  %v2164_v8 = vpop.f32.mrf.mxu2 }
 0x2e6   :  { %3218 = vmatmul.f32.gmra.mxu3 %v4681_v31 }
 0x2e7   :  { %3124 = vmatmul.f32.gmra.mxu1 %v5962_v4  ;;  %v2204_v32 = vpop.f32.mrf.mxu3 }
 0x2eb   :  { %v2115_v61 = vpop.f32.mrf.mxu1 }
 0x2ec   :  { %v2258_v19 = vpop.f32.mrf.mxu0 }
 0x2ed   :  { %v2259_v54 = vadd.f32 %v2258_v19, %v2199_v53 }
 0x2f5   :  { %v2334_v31 = vpop.f32.mrf.mxu2 }
 0x2f6   :  { %v2294_v37 = vpop.f32.mrf.mxu1  ;;  %v2335_v62 = vadd.f32 %v2334_v31, %v5630_v33 }
 0x2f7   :  { %v2295_v38 = vadd.f32 %v2294_v37, %v2259_v54  ;;  %v2418_v17 = vpop.f32.mrf.mxu3 }
 0x2f8   :  { %v2419_v41 = vadd.f32 %v2418_v17, %v2335_v62 }
 0x2f9   :  { %3222 = vst [vmem:[%s5673_s7] sm:$0xff] %v2295_v38 }
 0x2fc   :  { %v2262_v24 = vpop.f32.mrf.mxu0 }
 0x302   :  { %v2298_v60 = vpop.f32.mrf.mxu1  ;;  %v2342_v49 = vpop.f32.mrf.mxu2 }
 0x305   :  { %v5636_v57 = vpop.permute.xlu1 %1972 }
 0x306   :  { %v2036_v28 = vadd.f32 %v2035_v44, %v5636_v57  ;;  %v2466_v1 = vpop.f32.mrf.mxu0  ;;  %v2343_v23 = vadd.f32 %v2342_v49, %v5636_v57 }
 0x307   :  { %v2467_v11 = vadd.f32 %v2466_v1, %v2419_v41 }
 0x308   :  { %v2116_v43 = vadd.f32 %v2115_v61, %v2036_v28 }
 0x30a   :  { %v2165_v4 = vadd.f32 %v2164_v8, %v2116_v43  ;;  %v2422_v2 = vpop.f32.mrf.mxu3 }
 0x30b   :  { %v2423_v6 = vadd.f32 %v2422_v2, %v2343_v23 }
 0x30c   :  { %v2205_v50 = vadd.f32 %v2204_v32, %v2165_v4 }
 0x30e   :  { %v2263_v42 = vadd.f32 %v2262_v24, %v2205_v50 }
 0x310   :  { %v2299_v0 = vadd.f32 %v2298_v60, %v2263_v42  ;;  %v2505_v35 = vpop.f32.mrf.mxu1  ;;  %v2565_v55 = vpop.f32.mrf.mxu2 }
 0x311   :  { %v2506_v51 = vadd.f32 %v2505_v35, %v2467_v11 }
 0x312   :  { %3226 = vst [vmem:[%s5673_s7 + $0x20] sm:$0x1] %v2299_v0 }
 0x313   :  { %v2566_v59 = vadd.f32 %v2565_v55, %v2506_v51  ;;  %v2601_v13 = vpop.f32.mrf.mxu3 }
 0x315   :  { %v2602_v15 = vadd.f32 %v2601_v13, %v2566_v59 }
 0x317   :  { %3223 = vst [vmem:[%s5673_s7 + $0x8] sm:$0xff] %v2602_v15  ;;  %v2471_v9 = vpop.f32.mrf.mxu0 }
 0x318   :  { %v2472_v16 = vadd.f32 %v2471_v9, %v2423_v6 }
 0x320   :  { %v2511_v18 = vpop.f32.mrf.mxu1 }
 0x321   :  { %v2512_v56 = vadd.f32 %v2511_v18, %v2472_v16  ;;  %v2569_v12 = vpop.f32.mrf.mxu2  ;;  %v2641_v63 = vpop.f32.mrf.mxu0 }
 0x322   :  { %v2642_v48 = vadd.f32 %v2641_v63, %v5630_v33 }
 0x323   :  { %v2570_v7 = vadd.f32 %v2569_v12, %v2512_v56 }
 0x324   :  { %v2605_v5 = vpop.f32.mrf.mxu3 }
 0x325   :  { %v2606_v30 = vadd.f32 %v2605_v5, %v2570_v7 }
 0x327   :  { %3227 = vst [vmem:[%s5673_s7 + $0x28] sm:$0x1] %v2606_v30 }
 0x32b   :  { %v2725_v52 = vpop.f32.mrf.mxu1 }
 0x32c   :  { %v2726_v10 = vadd.f32 %v2725_v52, %v2642_v48  ;;  %v2773_v45 = vpop.f32.mrf.mxu2 }
 0x32e   :  { %v2774_v25 = vadd.f32 %v2773_v45, %v2726_v10  ;;  %v2812_v14 = vpop.f32.mrf.mxu3 }
 0x330   :  { %v2813_v39 = vadd.f32 %v2812_v14, %v2774_v25 }
 0x331   :  { %v2649_v22 = vpop.f32.mrf.mxu0 }
 0x332   :  { %v2650_v27 = vadd.f32 %v2649_v22, %v5636_v57 }
 0x339   :  { %v2778_v21 = vpop.f32.mrf.mxu2 }
 0x33a   :  { %v2729_v29 = vpop.f32.mrf.mxu1 }
 0x33b   :  { %v2730_v40 = vadd.f32 %v2729_v29, %v2650_v27  ;;  %v2872_v34 = vpop.f32.mrf.mxu0 }
 0x33c   :  { %v2873_v3 = vadd.f32 %v2872_v34, %v2813_v39  ;;  %v2818_v46 = vpop.f32.mrf.mxu3 }
 0x33d   :  { %v2779_v20 = vadd.f32 %v2778_v21, %v2730_v40 }
 0x33f   :  { %v2819_v58 = vadd.f32 %v2818_v46, %v2779_v20 }
 0x344   :  { %v2908_v44 = vpop.f32.mrf.mxu1  ;;  %v2948_v19 = vpop.f32.mrf.mxu2 }
 0x345   :  { %v2909_v47 = vadd.f32 %v2908_v44, %v2873_v3  ;;  %v2949_v54 = vadd.f32 %v2948_v19, %v5630_v33 }
 0x346   :  { %v3032_v8 = vpop.f32.mrf.mxu3 }
 0x347   :  { %3224 = vst [vmem:[%s5673_s7 + $0x10] sm:$0xff] %v2909_v47  ;;  %v3033_v32 = vadd.f32 %v3032_v8, %v2949_v54 }
 0x349   :  { %v2876_v61 = vpop.f32.mrf.mxu0 }
 0x34a   :  { %v2877_v36 = vadd.f32 %v2876_v61, %v2819_v58 }
 0x34d   :  { %v2912_v26 = vpop.f32.mrf.mxu1 }
 0x34e   :  { %v2913_v53 = vadd.f32 %v2912_v26, %v2877_v36 }
 0x350   :  { %3228 = vst [vmem:[%s5673_s7 + $0x30] sm:$0x1] %v2913_v53 }
 0x355   :  { %v3080_v37 = vpop.f32.mrf.mxu0 }
 0x356   :  { %v2956_v38 = vpop.f32.mrf.mxu2  ;;  %v3081_v17 = vadd.f32 %v3080_v37, %v3033_v32 }
 0x357   :  { %v2957_v28 = vadd.f32 %v2956_v38, %v5636_v57 }
 0x359   :  { %v3036_v31 = vpop.f32.mrf.mxu3 }
 0x35a   :  { %v3037_v4 = vadd.f32 %v3036_v31, %v2957_v28 }
 0x35c   :  { %v3119_v24 = vpop.f32.mrf.mxu1 }
 0x35d   :  { %v3120_v60 = vadd.f32 %v3119_v24, %v3081_v17  ;;  %v3085_v62 = vpop.f32.mrf.mxu0 }
 0x35e   :  { %v3179_v49 = vpop.f32.mrf.mxu2  ;;  %v3086_v1 = vadd.f32 %v3085_v62, %v3037_v4 }
 0x35f   :  { %v3180_v43 = vadd.f32 %v3179_v49, %v3120_v60 }
 0x361   :  { %v3215_v2 = vpop.f32.mrf.mxu3 }
 0x362   :  { %v3216_v50 = vadd.f32 %v3215_v2, %v3180_v43 }
 0x364   :  { %3225 = vst [vmem:[%s5673_s7 + $0x18] sm:$0xff] %v3216_v50  ;;  %v3125_v33 = vpop.f32.mrf.mxu1 }
 0x365   :  { %v3126_v41 = vadd.f32 %v3125_v33, %v3086_v1 }
 0x366   :  { %v3183_v42 = vpop.f32.mrf.mxu2 }
 0x367   :  { %v3184_v11 = vadd.f32 %v3183_v42, %v3126_v41 }
 0x369   :  { %v3219_v0 = vpop.f32.mrf.mxu3 }
 0x36a   :  { %v3220_v35 = vadd.f32 %v3219_v0, %v3184_v11 }
 0x36c   :  { %3229 = vst [vmem:[%s5673_s7 + $0x38] sm:$0x1] %v3220_v35 }

</bundles_post_ra>
